<compile_context>
chip_gen: v5e
topology: v5e:2x2
jax: 0.10.0
libtpu: 0.0.40
codegen_flags: <defaults>
</compile_context>

<pallas_src>
import numpy as np
import jax
import jax.numpy as jnp
from jax.experimental import pallas as pl
from jax.experimental.pallas import tpu as pltpu


# ----------------------------------------------------------------------------
# Kernel
# ----------------------------------------------------------------------------
def _translation_kernel(f1_ref, f2_ref, w1t_ref, b1_ref, w2t_ref, b2_ref,
                        w3t_ref, b3_ref, et_ref, out_ref):
    """Fused: conv1_feat1+ReLU, conv1_feat2+ReLU (half res), x2 upsample of the
    feature2 branch, conv2.  Channels on sublanes, flattened spatial on lanes."""
    # f32 feature blocks straight from HBM; cast in-register for the MXU.
    x1 = f1_ref[...].astype(jnp.bfloat16)               # (512, tn)
    x2 = f2_ref[...].astype(jnp.bfloat16)               # (512, tn//4)

    # conv1_feat1 + ReLU (full resolution)
    h1 = jnp.dot(w1t_ref[...], x1, preferred_element_type=jnp.float32)
    h1 = jnp.maximum(h1 + b1_ref[...], 0.0)              # (H, tn)

    # conv1_feat2 + ReLU (half resolution)
    h2 = jnp.dot(w2t_ref[...], x2, preferred_element_type=jnp.float32)
    h2 = jnp.maximum(h2 + b2_ref[...], 0.0)              # (H, tn//4)

    # conv2 distributed over the sum (1x1 conv is linear): full-res part...
    g1 = jnp.dot(w3t_ref[...], h1, preferred_element_type=jnp.float32)   # (C_out, tn)
    # ...and half-res part, then the x2 nearest upsample expressed as a matmul
    # with a constant 0/1 expansion matrix (exact selection, stays in VMEM).
    g2 = jnp.dot(w3t_ref[...], h2, preferred_element_type=jnp.float32)   # (C_out, tn//4)
    g2 = jnp.dot(g2, et_ref[...], preferred_element_type=jnp.float32)    # (C_out, tn)

    out_ref[...] = (g1 + g2 + b3_ref[...]).astype(out_ref.dtype)


# ----------------------------------------------------------------------------
# Tiling helpers
# ----------------------------------------------------------------------------
def _pick_spatial_tile(S, w, tn_max=2048):
    """Lane-axis (flattened spatial) tile.  Must be a multiple of 2*w (whole
    pairs of image rows, so the half-res block is the contiguous slab starting
    at i*tn/4) and a multiple of 512 (half-res lane dim 128-aligned) unless the
    tile covers the full per-image spatial extent."""
    if S <= tn_max:
        return S
    step = 512
    while step % (2 * w) != 0:
        step += 512
    tn, c = 0, step
    while c <= tn_max:
        if S % c == 0:
            tn = c
        c += step
    return tn if tn else S


def _expansion_matrix(tn, w):
    """E^T[q, j] = 1 iff full-res flattened pixel j of a tile maps to half-res
    flattened pixel q under x2 nearest upsampling of an image of width w."""
    j = np.arange(tn)
    q = (j // w // 2) * (w // 2) + (j % w) // 2
    et = np.zeros((tn // 4, tn), np.float32)
    et[q, j] = 1.0
    return jnp.asarray(et)


# ----------------------------------------------------------------------------
# Module-level forward + params
# ----------------------------------------------------------------------------
def init_params(key, num_classes=10, hidden_layer_dim=128, c_in=512):
    """Kaiming-normal (relu) init, zero biases — matches the PyTorch __init__.
    Weights stored transposed as (out_channels, in_channels)."""
    k1, k2, k3 = jax.random.split(key, 3)
    std1 = (2.0 / c_in) ** 0.5
    std3 = (2.0 / hidden_layer_dim) ** 0.5
    w1t = jax.random.normal(k1, (hidden_layer_dim, c_in), jnp.float32) * std1
    w2t = jax.random.normal(k2, (hidden_layer_dim, c_in), jnp.float32) * std1
    w3t = jax.random.normal(k3, (3 * num_classes, hidden_layer_dim), jnp.float32) * std3
    b1 = jnp.zeros((hidden_layer_dim, 1), jnp.float32)
    b2 = jnp.zeros((hidden_layer_dim, 1), jnp.float32)
    b3 = jnp.zeros((3 * num_classes, 1), jnp.float32)
    return w1t, b1, w2t, b2, w3t, b3


def translation_branch(feature1, feature2, params, *, tn_max=2048):
    """feature1: (B, 512, h, w) f32 NCHW, feature2: (B, 512, h//2, w//2).
    Returns (B, 3*num_classes, 8h, 8w) f32 NCHW, matching the PyTorch module."""
    w1t, b1, w2t, b2, w3t, b3 = params
    B, C, h, w = feature1.shape
    assert feature2.shape == (B, C, h // 2, w // 2), feature2.shape
    assert h % 2 == 0 and w % 2 == 0
    H = w1t.shape[0]
    C_out = w3t.shape[0]
    S = h * w
    S2 = S // 4

    tn = _pick_spatial_tile(S, w, tn_max)
    n_sp = S // tn

    # Free reshapes (row-major collapse of the trailing spatial dims).
    f1 = feature1.reshape(B, C, S)
    f2 = feature2.reshape(B, C, S2)

    w1t_b = w1t.astype(jnp.bfloat16)       # tiny one-time weight casts
    w2t_b = w2t.astype(jnp.bfloat16)
    et = _expansion_matrix(tn, w)          # (tn//4, tn) f32, resident in VMEM

    _full = lambda b, i: (0, 0)

    out = pl.pallas_call(
        _translation_kernel,
        out_shape=jax.ShapeDtypeStruct((B, C_out, S), jnp.float32),
        grid=(B, n_sp),
        in_specs=[
            pl.BlockSpec((None, C, tn), lambda b, i: (b, 0, i)),        # feature1 (f32)
            pl.BlockSpec((None, C, tn // 4), lambda b, i: (b, 0, i)),   # feature2 (f32)
            pl.BlockSpec((H, C), _full),          # W1^T (bf16, resident)
            pl.BlockSpec((H, 1), _full),          # b1   (f32)
            pl.BlockSpec((H, C), _full),          # W2^T (bf16, resident)
            pl.BlockSpec((H, 1), _full),          # b2   (f32)
            pl.BlockSpec((C_out, H), _full),      # W3^T (f32, resident)
            pl.BlockSpec((C_out, 1), _full),      # b3   (f32)
            pl.BlockSpec((tn // 4, tn), _full),   # x2-upsample expansion matrix
        ],
        out_specs=pl.BlockSpec((None, C_out, tn), lambda b, i: (b, 0, i)),
        compiler_params=pltpu.CompilerParams(
            dimension_semantics=("parallel", "parallel"),
            vmem_limit_bytes=32 << 20),
    )(f1, f2, w1t_b, b1, w2t_b, b2, w3t, b3, et)

    out = out.reshape(B, C_out, h, w)
    # x8 nearest upsample in a single broadcast+reshape pass (commutes exactly
    # with the 1x1 conv2 already applied inside the kernel).
    out = jnp.broadcast_to(out.reshape(B, C_out, h, 1, w, 1),
                           (B, C_out, h, 8, w, 8)).reshape(B, C_out, 8 * h, 8 * w)
    return out


# ----------------------------------------------------------------------------
# Pure-JAX f32 reference (mirrors the PyTorch forward exactly)
# ----------------------------------------------------------------------------
def _reference(feature1, feature2, params):
    w1t, b1, w2t, b2, w3t, b3 = params
    f1 = jnp.einsum('oc,bchw->bohw', w1t, feature1) + b1.reshape(1, -1, 1, 1)
    f1 = jnp.maximum(f1, 0.0)
    f2 = jnp.einsum('oc,bchw->bohw', w2t, feature2) + b2.reshape(1, -1, 1, 1)
    f2 = jnp.maximum(f2, 0.0)
    f2 = jnp.repeat(jnp.repeat(f2, 2, axis=2), 2, axis=3)          # x2 nearest
    f = f1 + f2
    f = jnp.repeat(jnp.repeat(f, 8, axis=2), 8, axis=3)            # x8 nearest
    return jnp.einsum('oc,bchw->bohw', w3t, f) + b3.reshape(1, -1, 1, 1)


if __name__ == "__main__":
    key = jax.random.PRNGKey(0)
    k_f1, k_f2, k_p = jax.random.split(key, 3)

    B, C_in, h, w = 2, 512, 16, 16
    num_classes, hidden = 10, 128

    feature1 = jax.random.normal(k_f1, (B, C_in, h, w), jnp.float32)
    feature2 = jax.random.normal(k_f2, (B, C_in, h // 2, w // 2), jnp.float32)
    params = init_params(k_p, num_classes=num_classes,
                         hidden_layer_dim=hidden, c_in=C_in)

    out = jax.block_until_ready(translation_branch(feature1, feature2, params))

    assert out.shape == (B, 3 * num_classes, 8 * h, 8 * w), out.shape
    assert out.dtype == jnp.float32

    ref = jax.block_until_ready(_reference(feature1, feature2, params))
    max_err = float(jnp.max(jnp.abs(out - ref)))
    max_ref = float(jnp.max(jnp.abs(ref)))
    # Relative-to-peak check: bf16-streamed activations / conv1 weights with
    # f32 accumulation; conv2 and the upsample-expansion matmul run in f32.
    assert max_err <= 2e-2 * max_ref + 1e-3, (max_err, max_ref)

    print("KERNEL_OK")
</pallas_src>

<mosaic_0001>
module attributes {stable_mosaic.version = 11 : i64} {
  func.func @_translation_kernel(%arg0: i32, %arg1: i32, %arg2: memref<1x512x256xf32, #tpu.memory_space<vmem>>, %arg3: memref<1x512x64xf32, #tpu.memory_space<vmem>>, %arg4: memref<128x512xbf16, #tpu.memory_space<vmem>>, %arg5: memref<128x1xf32, #tpu.memory_space<vmem>>, %arg6: memref<128x512xbf16, #tpu.memory_space<vmem>>, %arg7: memref<128x1xf32, #tpu.memory_space<vmem>>, %arg8: memref<30x128xf32, #tpu.memory_space<vmem>>, %arg9: memref<30x1xf32, #tpu.memory_space<vmem>>, %arg10: memref<64x256xf32, #tpu.memory_space<vmem>>, %arg11: memref<1x30x256xf32, #tpu.memory_space<vmem>>) attributes {dimension_semantics = [#tpu.dimension_semantics<parallel>, #tpu.dimension_semantics<parallel>], iteration_bounds = array<i64: 2, 1>, scalar_prefetch = 0 : i64, scratch_operands = 0 : i64, tpu.core_type = #tpu.core_type<tc>, window_params = [{transform_indices = @transform_0, window_bounds = array<i64: 1, 512, 256>}, {transform_indices = @transform_1, window_bounds = array<i64: 1, 512, 64>}, {pipeline_mode = #tpu.pipeline_mode<synchronous>, transform_indices = @transform_2, window_bounds = array<i64: 128, 512>}, {pipeline_mode = #tpu.pipeline_mode<synchronous>, transform_indices = @transform_3, window_bounds = array<i64: 128, 1>}, {pipeline_mode = #tpu.pipeline_mode<synchronous>, transform_indices = @transform_4, window_bounds = array<i64: 128, 512>}, {pipeline_mode = #tpu.pipeline_mode<synchronous>, transform_indices = @transform_5, window_bounds = array<i64: 128, 1>}, {pipeline_mode = #tpu.pipeline_mode<synchronous>, transform_indices = @transform_6, window_bounds = array<i64: 30, 128>}, {pipeline_mode = #tpu.pipeline_mode<synchronous>, transform_indices = @transform_7, window_bounds = array<i64: 30, 1>}, {pipeline_mode = #tpu.pipeline_mode<synchronous>, transform_indices = @transform_8, window_bounds = array<i64: 64, 256>}, {transform_indices = @transform_9, window_bounds = array<i64: 1, 30, 256>}]} {
    %c0 = arith.constant 0 : index
    %c0_0 = arith.constant 0 : index
    %c0_1 = arith.constant 0 : index
    %0 = vector.load %arg2[%c0, %c0_0, %c0_1] : memref<1x512x256xf32, #tpu.memory_space<vmem>>, vector<1x512x256xf32>
    %1 = vector.shape_cast %0 : vector<1x512x256xf32> to vector<512x256xf32>
    %2 = arith.truncf %1 : vector<512x256xf32> to vector<512x256xbf16>
    %c0_2 = arith.constant 0 : index
    %c0_3 = arith.constant 0 : index
    %c0_4 = arith.constant 0 : index
    %3 = vector.load %arg3[%c0_2, %c0_3, %c0_4] : memref<1x512x64xf32, #tpu.memory_space<vmem>>, vector<1x512x64xf32>
    %4 = vector.shape_cast %3 : vector<1x512x64xf32> to vector<512x64xf32>
    %5 = arith.truncf %4 : vector<512x64xf32> to vector<512x64xbf16>
    %c0_5 = arith.constant 0 : index
    %c0_6 = arith.constant 0 : index
    %6 = vector.load %arg4[%c0_5, %c0_6] : memref<128x512xbf16, #tpu.memory_space<vmem>>, vector<128x512xbf16>
    %cst = arith.constant dense<0.000000e+00> : vector<128x256xf32>
    %7 = tpu.matmul %6, %2, %cst {dimension_numbers = #tpu.dot_dimension_numbers<[1], [0], [0], [1], [0, 0, 1, 1], [], []>} : vector<128x512xbf16>, vector<512x256xbf16>, vector<128x256xf32> -> vector<128x256xf32>
    %c0_7 = arith.constant 0 : index
    %c0_8 = arith.constant 0 : index
    %8 = vector.load %arg5[%c0_7, %c0_8] : memref<128x1xf32, #tpu.memory_space<vmem>>, vector<128x1xf32>
    %9 = vector.broadcast %8 : vector<128x1xf32> to vector<128x256xf32>
    %10 = arith.addf %7, %9 : vector<128x256xf32>
    %cst_9 = arith.constant 0.000000e+00 : f32
    %11 = vector.broadcast %cst_9 : f32 to vector<128x256xf32>
    %12 = arith.maximumf %10, %11 : vector<128x256xf32>
    %c0_10 = arith.constant 0 : index
    %c0_11 = arith.constant 0 : index
    %13 = vector.load %arg6[%c0_10, %c0_11] : memref<128x512xbf16, #tpu.memory_space<vmem>>, vector<128x512xbf16>
    %cst_12 = arith.constant dense<0.000000e+00> : vector<128x64xf32>
    %14 = tpu.matmul %13, %5, %cst_12 {dimension_numbers = #tpu.dot_dimension_numbers<[1], [0], [0], [1], [0, 0, 1, 1], [], []>} : vector<128x512xbf16>, vector<512x64xbf16>, vector<128x64xf32> -> vector<128x64xf32>
    %c0_13 = arith.constant 0 : index
    %c0_14 = arith.constant 0 : index
    %15 = vector.load %arg7[%c0_13, %c0_14] : memref<128x1xf32, #tpu.memory_space<vmem>>, vector<128x1xf32>
    %16 = vector.broadcast %15 : vector<128x1xf32> to vector<128x64xf32>
    %17 = arith.addf %14, %16 : vector<128x64xf32>
    %cst_15 = arith.constant 0.000000e+00 : f32
    %18 = vector.broadcast %cst_15 : f32 to vector<128x64xf32>
    %19 = arith.maximumf %17, %18 : vector<128x64xf32>
    %c0_16 = arith.constant 0 : index
    %c0_17 = arith.constant 0 : index
    %20 = vector.load %arg8[%c0_16, %c0_17] : memref<30x128xf32, #tpu.memory_space<vmem>>, vector<30x128xf32>
    %cst_18 = arith.constant dense<0.000000e+00> : vector<30x256xf32>
    %21 = tpu.matmul %20, %12, %cst_18 {dimension_numbers = #tpu.dot_dimension_numbers<[1], [0], [0], [1], [0, 0, 1, 1], [], []>} : vector<30x128xf32>, vector<128x256xf32>, vector<30x256xf32> -> vector<30x256xf32>
    %c0_19 = arith.constant 0 : index
    %c0_20 = arith.constant 0 : index
    %22 = vector.load %arg8[%c0_19, %c0_20] : memref<30x128xf32, #tpu.memory_space<vmem>>, vector<30x128xf32>
    %cst_21 = arith.constant dense<0.000000e+00> : vector<30x64xf32>
    %23 = tpu.matmul %22, %19, %cst_21 {dimension_numbers = #tpu.dot_dimension_numbers<[1], [0], [0], [1], [0, 0, 1, 1], [], []>} : vector<30x128xf32>, vector<128x64xf32>, vector<30x64xf32> -> vector<30x64xf32>
    %c0_22 = arith.constant 0 : index
    %c0_23 = arith.constant 0 : index
    %24 = vector.load %arg10[%c0_22, %c0_23] : memref<64x256xf32, #tpu.memory_space<vmem>>, vector<64x256xf32>
    %cst_24 = arith.constant dense<0.000000e+00> : vector<30x256xf32>
    %25 = tpu.matmul %23, %24, %cst_24 {dimension_numbers = #tpu.dot_dimension_numbers<[1], [0], [0], [1], [0, 0, 1, 1], [], []>} : vector<30x64xf32>, vector<64x256xf32>, vector<30x256xf32> -> vector<30x256xf32>
    %26 = arith.addf %21, %25 : vector<30x256xf32>
    %c0_25 = arith.constant 0 : index
    %c0_26 = arith.constant 0 : index
    %27 = vector.load %arg9[%c0_25, %c0_26] : memref<30x1xf32, #tpu.memory_space<vmem>>, vector<30x1xf32>
    %28 = vector.broadcast %27 : vector<30x1xf32> to vector<30x256xf32>
    %29 = arith.addf %26, %28 : vector<30x256xf32>
    %c0_27 = arith.constant 0 : index
    %c0_28 = arith.constant 0 : index
    %c0_29 = arith.constant 0 : index
    %30 = vector.load %arg11[%c0_27, %c0_28, %c0_29] : memref<1x30x256xf32, #tpu.memory_space<vmem>>, vector<1x30x256xf32>
    %31 = vector.shape_cast %30 : vector<1x30x256xf32> to vector<30x256xf32>
    %32 = vector.shape_cast %29 : vector<30x256xf32> to vector<1x30x256xf32>
    tpu.vector_store %arg11[%c0_27, %c0_28, %c0_29], %32 {strides = array<i32>} : memref<1x30x256xf32, #tpu.memory_space<vmem>>, vector<1x30x256xf32>,
    return
  }
  func.func @transform_0(%arg0: i32, %arg1: i32) -> (i32, i32, i32) {
    %c0_i32 = arith.constant 0 : i32
    %c0_i32_0 = arith.constant 0 : i32
    return %arg0, %c0_i32, %arg1 : i32, i32, i32
  }
  func.func @transform_1(%arg0: i32, %arg1: i32) -> (i32, i32, i32) {
    %c0_i32 = arith.constant 0 : i32
    %c0_i32_0 = arith.constant 0 : i32
    return %arg0, %c0_i32, %arg1 : i32, i32, i32
  }
  func.func @transform_2(%arg0: i32, %arg1: i32) -> (i32, i32) {
    %c0_i32 = arith.constant 0 : i32
    %c0_i32_0 = arith.constant 0 : i32
    %c0_i32_1 = arith.constant 0 : i32
    return %c0_i32, %c0_i32_0 : i32, i32
  }
  func.func @transform_3(%arg0: i32, %arg1: i32) -> (i32, i32) {
    %c0_i32 = arith.constant 0 : i32
    %c0_i32_0 = arith.constant 0 : i32
    %c0_i32_1 = arith.constant 0 : i32
    return %c0_i32, %c0_i32_0 : i32, i32
  }
  func.func @transform_4(%arg0: i32, %arg1: i32) -> (i32, i32) {
    %c0_i32 = arith.constant 0 : i32
    %c0_i32_0 = arith.constant 0 : i32
    %c0_i32_1 = arith.constant 0 : i32
    return %c0_i32, %c0_i32_0 : i32, i32
  }
  func.func @transform_5(%arg0: i32, %arg1: i32) -> (i32, i32) {
    %c0_i32 = arith.constant 0 : i32
    %c0_i32_0 = arith.constant 0 : i32
    %c0_i32_1 = arith.constant 0 : i32
    return %c0_i32, %c0_i32_0 : i32, i32
  }
  func.func @transform_6(%arg0: i32, %arg1: i32) -> (i32, i32) {
    %c0_i32 = arith.constant 0 : i32
    %c0_i32_0 = arith.constant 0 : i32
    %c0_i32_1 = arith.constant 0 : i32
    return %c0_i32, %c0_i32_0 : i32, i32
  }
  func.func @transform_7(%arg0: i32, %arg1: i32) -> (i32, i32) {
    %c0_i32 = arith.constant 0 : i32
    %c0_i32_0 = arith.constant 0 : i32
    %c0_i32_1 = arith.constant 0 : i32
    return %c0_i32, %c0_i32_0 : i32, i32
  }
  func.func @transform_8(%arg0: i32, %arg1: i32) -> (i32, i32) {
    %c0_i32 = arith.constant 0 : i32
    %c0_i32_0 = arith.constant 0 : i32
    %c0_i32_1 = arith.constant 0 : i32
    return %c0_i32, %c0_i32_0 : i32, i32
  }
  func.func @transform_9(%arg0: i32, %arg1: i32) -> (i32, i32, i32) {
    %c0_i32 = arith.constant 0 : i32
    %c0_i32_0 = arith.constant 0 : i32
    return %arg0, %c0_i32, %arg1 : i32, i32, i32
  }
}

</mosaic_0001>

<bundles_post_ra>
// kernel: tpu_custom_call.1
= control target key start
LH: loop header
LB: loop body
LE: loop exit
PB: predicated region body
PF: predicated region fallthrough
CT: control target
= control target key end

     0   :  { %14 = vsyncpa [#allocation3], 0  ;;  %s4199_s0 = inlined_call_operand.hbm [shape: f32[2,512,256], index: 0, kind: input, shape index: {}]   ;;  %s4200_s1 = inlined_call_operand.vmem [shape: f32[2,512,64], index: 1, kind: input, shape index: {}]   ;;  %s4201_s2 = inlined_call_operand.vmem [shape: bf16[128,512], index: 2, kind: input, shape index: {}]   ;;  %s4202_s3 = inlined_call_operand.vmem [shape: f32[128,1], index: 3, kind: input, shape index: {}]   ;;  %s4203_s4 = inlined_call_operand.vmem [shape: bf16[128,512], index: 4, kind: input, shape index: {}]   ;;  %s4204_s5 = inlined_call_operand.vmem [shape: f32[128,1], index: 5, kind: input, shape index: {}]   ;;  %s4205_s6 = inlined_call_operand.vmem [shape: f32[30,128], index: 6, kind: input, shape index: {}]   ;;  %s4206_s7 = inlined_call_operand.vmem [shape: f32[30,1], index: 7, kind: input, shape index: {}]   ;;  %s4207_s8 = inlined_call_operand.vmem [shape: f32[64,256], index: 8, kind: input, shape index: {}]   ;;  %s4208_s9 = inlined_call_operand.vmem [shape: f32[2,30,256], index: 9, kind: output, shape index: {}]  }
   0x1   :  { %16 = vsyncpa [#allocation3 + $0x1], 0  ;;  %s2835_s30 = smov 0   ;;  %s2837_s10 = smov 0  }
   0x2   :  { %s2839_s11 = smov 0   ;;  %s2841_s12 = smov 0  }
   0x3   :  { %s2843_s13 = smov 0   ;;  %s2845_s14 = smov 0  }
   0x4 LB: > { %s2245_s15 = sadd.s32 4294967295, %s2780_s14   ;;  %s34_s16 = sadd.s32 1, %s2776_s13  ;;  %s2780_s14 = sphi %s2845_s14, %s22_s14   ;;  %s2776_s13 = sphi %s2843_s13, %s4289_s13   ;;  %s2772_s12 = sphi %s2841_s12, %s4288_s12   ;;  %s2768_s11 = sphi %s2839_s11, %s4287_s11   ;;  %s2764_s10 = sphi %s2837_s10, %s4286_s10   ;;  %s2760_s30 = sphi %s2835_s30, %s4285_s30  }
   0x5   : > { %p36_p0 = scmp.ge.s32.totalorder %s34_s16, 2  ;;  %s43_s17 = sadd.s32 1, %s2768_s11 }
   0x6   : > { %p50_p1 = scmp.ne.s32.totalorder %s2768_s11, %s2764_s10  ;;  %p51_p2 = scmp.eq.s32.totalorder %s2780_s14, 0 }
   0x7   : > { %s4291_s16 = smov (%p36_p0, %s34_s16), 0  ;;  %p56_p4 = scmp.ne.s32.totalorder %s2764_s10, %s2760_s30 }
   0x8   : > { %4223 = sst [smem:[#allocation5_spill]] %s4291_s16  ;;  %p2871_p3 = por %p51_p2, %p50_p1 }
   0x9   : > { %s38_s19 = ssub.s32 %s2776_s13, %s4291_s16  ;;  %p57_p5 = scmp.eq.s32.totalorder %s2245_s15, 0 }
   0xa   : > { %p41_p6 = scmp.eq.s32.totalorder %s38_s19, 0  ;;  %p2645_p8 = scmp.lt.s32.totalorder %s2780_s14, 2 }
   0xb   : > { %p2878_p7 = por %p57_p5, %p56_p4  ;;  %s304_s22 = sand.u32 1, %s2768_s11  }
   0xc   : > { %s2884_s21 = scalar_select %p41_p6, %s2768_s11, %s43_s17  }
   0xd   : > { %s2524_s23 = sshll.u32 %s2776_s13, 10  ;;  %s2249_s24 = sshll.u32 %s304_s22, 10 }
   0xe   : > { %s315_s27 = scalar_lea.hbm %s4199_s0, %s2524_s23  ;;  %s308_s29 = scalar_lea.vmem [#allocation2], %s2249_s24 }
   0xf   : > { %s316_s28 = sshll.u32 %s315_s27, 4  ;;  %s318_s30 = sshll.u32 %s308_s29, 4  ;;  %s317_s28 = int_to_ptr.hbm [resolvable:$true] %s316_s28  ;;  %s319_s30 = int_to_ptr.vmem [resolvable:$true] %s318_s30 }
  0x10   : > { %p2642_p9 = pnand %p2645_p8, %p2871_p3  ;;  %p2252_p10 = scmp.ge.s32.totalorder %s2780_s14, 1 }
  0x11   : > { %p337_p11 = scmp.lt.s32.totalorder %s2780_s14, 3  ;;  %s305_s15 = scalar_lea.sflag [#allocation3], %s304_s22 }
  0x12   : > { %s2782_s19 = smov 256   ;;  %s2783_s17 = smov 16  }
  0x13   : > { %2644 = dma.hbm_to_vmem [thread:$0]  (!%p2642_p9), %s317_s28, 16384, %s319_s30, %s305_s15, %s2782_s19, %s2782_s19, %s2783_s17  }
  0x14   : > { %p338_p12 = pnand %p2252_p10, %p337_p11 }
  0x16   : > { %341 = sbr.rel (%p338_p12) target bundleno = 911 (0x38f), region = 56 }
  0x1b   : > { %s343_s16 = sand.u32 1, %s2764_s10  }
  0x1c   : > { %s2253_s25 = sshll.u32 %s343_s16, 10  ;;  %s344_s23 = scalar_lea.sflag [#allocation3], %s343_s16 }
  0x1d   : > { %s2896_s26 = scalar_lea.vmem [#allocation2], %s2253_s25 }
  0x1e   : > { %2755 = dma.done.wait (%p2878_p7), %s344_s23, 16384  }
  0x1f   : > { %2757 = vsyncadd (%p2878_p7), %s344_s23, 4294950912  ;;  %v2784_v0 = vmov 0   ;;  %v1461_v1 = vld [vmem:[%s4204_s5 + $0x78] sm:$0xff]  ;;  %v1459_v2 = vld [vmem:[%s4204_s5 + $0x68] sm:$0xff]  ;;  %p396_p13 = scmp.lt.s32.totalorder %s2772_s12, 1  ;;  %vm1963_vm0 = vcmask 523264  }
  0x20   : > { %2698 = vset.pattern.permute.xlu1 %v2784_v0  ;;  %2697 = vset.pattern.permute.xlu0 %v2784_v0  ;;  %v442_v3 = vld [vmem:[%s2896_s26 + $0xe0] sm:$0xff]  ;;  %v444_v4 = vld [vmem:[%s2896_s26 + $0xf0] sm:$0xff]  ;;  %v1457_v40 = vld [vmem:[%s4204_s5 + $0x58] sm:$0xff] }
  0x21   : > { %2699 = vset.pattern.permute.xlu2 %v2784_v0  ;;  %1539 = vperm.xlu0 %2697, %v1461_v1   ;;  %v474_v5 = vld [vmem:[%s2896_s26 + $0x1e0] sm:$0xff]  ;;  %v476_v6 = vld [vmem:[%s2896_s26 + $0x1f0] sm:$0xff]  ;;  %v556_v7 = vpack.c.bf16 %v444_v4, %v442_v3  ;;  %v1455_v52 = vld [vmem:[%s4204_s5 + $0x48] sm:$0xff]  ;;  %s4293_s12 = smov (!%p396_p13, %s2772_s12), 1 }
  0x22   : > { %1529 = vperm.xlu1 %2698, %v1459_v2   ;;  %v572_v8 = vpack.c.bf16 %v476_v6, %v474_v5  ;;  %v506_v9 = vld [vmem:[%s2896_s26 + $0x2e0] sm:$0xff]  ;;  %v508_v10 = vld [vmem:[%s2896_s26 + $0x2f0] sm:$0xff]  ;;  %1519 = vperm.xlu2 %2699, %v1457_v40   ;;  %s2525_s30 = sshll.u32 %s4293_s12, 9 }
  0x23   : > { %v538_v11 = vld [vmem:[%s2896_s26 + $0x3e0] sm:$0xff]  ;;  %v588_v12 = vpack.c.bf16 %v508_v10, %v506_v9  ;;  %v540_v13 = vld [vmem:[%s2896_s26 + $0x3f0] sm:$0xff]  ;;  %990 = vmatpush.bf16.msra.mxu0 %v556_v7  ;;  %s3524_s17 = scalar_lea.vmem %s4200_s1, %s2525_s30  ;;  %s2526_s30 = sshll.u32 %s4293_s12, 6 }
  0x24   : > { %v438_v14 = vld [vmem:[%s2896_s26 + $0xc0] sm:$0xff]  ;;  %v440_v15 = vld [vmem:[%s2896_s26 + $0xd0] sm:$0xff]  ;;  %1039 = vmatpush.bf16.msra.mxu1 %v572_v8  ;;  %v604_v16 = vpack.c.bf16 %v540_v13, %v538_v11 }
  0x25   : > { %v554_v17 = vpack.c.bf16 %v440_v15, %v438_v14  ;;  %v470_v18 = vld [vmem:[%s2896_s26 + $0x1c0] sm:$0xff]  ;;  %v472_v19 = vld [vmem:[%s2896_s26 + $0x1d0] sm:$0xff]  ;;  %1088 = vmatpush.bf16.msra.mxu2 %v588_v12 }
  0x26   : > { %v502_v20 = vld [vmem:[%s2896_s26 + $0x2c0] sm:$0xff]  ;;  %v570_v21 = vpack.c.bf16 %v472_v19, %v470_v18  ;;  %v504_v22 = vld [vmem:[%s2896_s26 + $0x2d0] sm:$0xff]  ;;  %1137 = vmatpush.bf16.msra.mxu3 %v604_v16 }
  0x27   : > { %v534_v23 = vld [vmem:[%s2896_s26 + $0x3c0] sm:$0xff]  ;;  %v536_v24 = vld [vmem:[%s2896_s26 + $0x3d0] sm:$0xff]  ;;  %v586_v25 = vpack.c.bf16 %v504_v22, %v502_v20  ;;  %991 = vmatpush.bf16.msra.mxu0 %v554_v17 }
  0x28   : > { %v602_v26 = vpack.c.bf16 %v536_v24, %v534_v23  ;;  %v1460_v27 = vld [vmem:[%s4204_s5 + $0x70] sm:$0xff]  ;;  %v1458_v28 = vld [vmem:[%s4204_s5 + $0x60] sm:$0xff]  ;;  %1040 = vmatpush.bf16.msra.mxu1 %v570_v21  ;;  %v1451_v24 = vld [vmem:[%s4204_s5 + $0x28] sm:$0xff] }
  0x29   : > { %v434_v29 = vld [vmem:[%s2896_s26 + $0xa0] sm:$0xff]  ;;  %v436_v30 = vld [vmem:[%s2896_s26 + $0xb0] sm:$0xff]  ;;  %1089 = vmatpush.bf16.msra.mxu2 %v586_v25  ;;  %1534 = vperm.xlu0 %2697, %v1460_v27  }
  0x2a   : > { %v466_v31 = vld [vmem:[%s2896_s26 + $0x1a0] sm:$0xff]  ;;  %v468_v32 = vld [vmem:[%s2896_s26 + $0x1b0] sm:$0xff]  ;;  %v552_v33 = vpack.c.bf16 %v436_v30, %v434_v29  ;;  %1138 = vmatpush.bf16.msra.mxu3 %v602_v26  ;;  %1524 = vperm.xlu1 %2698, %v1458_v28   ;;  %v1453_v29 = vld [vmem:[%s4204_s5 + $0x38] sm:$0xff] }
  0x2b   : > { %v568_v34 = vpack.c.bf16 %v468_v32, %v466_v31  ;;  %v498_v35 = vld [vmem:[%s2896_s26 + $0x2a0] sm:$0xff]  ;;  %v500_v36 = vld [vmem:[%s2896_s26 + $0x2b0] sm:$0xff] }
  0x2c   : > { %v530_v37 = vld [vmem:[%s2896_s26 + $0x3a0] sm:$0xff]  ;;  %v584_v38 = vpack.c.bf16 %v500_v36, %v498_v35  ;;  %v532_v39 = vld [vmem:[%s2896_s26 + $0x3b0] sm:$0xff]  ;;  %992 = vmatpush.bf16.msra.mxu0 %v552_v33 }
  0x2d   : > { %v430_v41 = vld [vmem:[%s2896_s26 + $0x80] sm:$0xff]  ;;  %v600_v42 = vpack.c.bf16 %v532_v39, %v530_v37  ;;  %v432_v43 = vld [vmem:[%s2896_s26 + $0x90] sm:$0xff]  ;;  %1041 = vmatpush.bf16.msra.mxu1 %v568_v34 }
  0x2e   : > { %v462_v44 = vld [vmem:[%s2896_s26 + $0x180] sm:$0xff]  ;;  %v464_v45 = vld [vmem:[%s2896_s26 + $0x190] sm:$0xff]  ;;  %v550_v49 = vpack.c.bf16 %v432_v43, %v430_v41  ;;  %1090 = vmatpush.bf16.msra.mxu2 %v584_v38 }
  0x2f   : > { %v494_v46 = vld [vmem:[%s2896_s26 + $0x280] sm:$0xff]  ;;  %v496_v47 = vld [vmem:[%s2896_s26 + $0x290] sm:$0xff]  ;;  %v566_v50 = vpack.c.bf16 %v464_v45, %v462_v44  ;;  %1139 = vmatpush.bf16.msra.mxu3 %v600_v42 }
  0x30   : > { %v526_v48 = vld [vmem:[%s2896_s26 + $0x380] sm:$0xff]  ;;  %v528_v51 = vld [vmem:[%s2896_s26 + $0x390] sm:$0xff]  ;;  %v582_v53 = vpack.c.bf16 %v496_v47, %v494_v46  ;;  %993 = vmatpush.bf16.msra.mxu0 %v550_v49  ;;  %v2268_v47 = vld [vmem:[%s4201_s2 + $0x8] sm:$0xf] }
  0x31   : > { %v426_v54 = vld [vmem:[%s2896_s26 + $0x60] sm:$0xff]  ;;  %v428_v55 = vld [vmem:[%s2896_s26 + $0x70] sm:$0xff]  ;;  %v598_v57 = vpack.c.bf16 %v528_v51, %v526_v48  ;;  %1042 = vmatpush.bf16.msra.mxu1 %v566_v50  ;;  %1509 = vperm.xlu0 %2697, %v1455_v52   ;;  %v2530_v48 = vld [vmem:[%s4201_s2 + $0x14] sm:$0xf0] }
  0x32   : > { %v458_v56 = vld [vmem:[%s2896_s26 + $0x160] sm:$0xff]  ;;  %v460_v58 = vld [vmem:[%s2896_s26 + $0x170] sm:$0xff]  ;;  %v548_v0 = vpack.c.bf16 %v428_v55, %v426_v54  ;;  %1091 = vmatpush.bf16.msra.mxu2 %v582_v53  ;;  %v1449_v50 = vld [vmem:[%s4204_s5 + $0x18] sm:$0xff] }
  0x33   : > { %v490_v59 = vld [vmem:[%s2896_s26 + $0x260] sm:$0xff]  ;;  %v492_v60 = vld [vmem:[%s2896_s26 + $0x270] sm:$0xff]  ;;  %v564_v1 = vpack.c.bf16 %v460_v58, %v458_v56  ;;  %1140 = vmatpush.bf16.msra.mxu3 %v598_v57  ;;  %v2528_v51 = vld [vmem:[%s4201_s2 + $0xc] sm:$0xf]  ;;  %v3033_v56 = vor.u32 %v2530_v48, %v2268_v47 }
  0x34   : > { %v1454_v61 = vld [vmem:[%s4204_s5 + $0x40] sm:$0xff]  ;;  %v524_v63 = vld [vmem:[%s2896_s26 + $0x370] sm:$0xff]  ;;  %v580_v4 = vpack.c.bf16 %v492_v60, %v490_v59  ;;  %994 = vmatpush.bf16.msra.mxu0 %v548_v0  ;;  %v2270_v52 = vld [vmem:[%s4201_s2 + $0x18] sm:$0xf0] }
  0x35   : > { %v522_v62 = vld [vmem:[%s2896_s26 + $0x360] sm:$0xff]  ;;  %v1456_v2 = vld [vmem:[%s4204_s5 + $0x50] sm:$0xff]  ;;  %1504 = vperm.xlu1 %2698, %v1454_v61   ;;  %1043 = vmatpush.bf16.msra.mxu1 %v564_v1  ;;  %v3035_v57 = vor.u32 %v2528_v51, %v2270_v52  ;;  %v749_v60 = vld [vmem:[%s4202_s3 + $0x78] sm:$0xff] }
  0x36   : > { %v422_v3 = vld [vmem:[%s2896_s26 + $0x40] sm:$0xff]  ;;  %v424_v5 = vld [vmem:[%s2896_s26 + $0x50] sm:$0xff]  ;;  %v596_v8 = vpack.c.bf16 %v524_v63, %v522_v62  ;;  %1514 = vperm.xlu2 %2699, %v1456_v2   ;;  %1092 = vmatpush.bf16.msra.mxu2 %v580_v4  ;;  %v1447_v61 = vld [vmem:[%s4204_s5 + $0x8] sm:$0xff] }
  0x37   : > { %v454_v6 = vld [vmem:[%s2896_s26 + $0x140] sm:$0xff]  ;;  %v456_v7 = vld [vmem:[%s2896_s26 + $0x150] sm:$0xff]  ;;  %v546_v13 = vpack.c.bf16 %v424_v5, %v422_v3  ;;  %v2284_v2 = vld [vmem:[%s4201_s2 + $0x28] sm:$0xf] }
  0x38   : > { %v486_v9 = vld [vmem:[%s2896_s26 + $0x240] sm:$0xff]  ;;  %v488_v10 = vld [vmem:[%s2896_s26 + $0x250] sm:$0xff]  ;;  %v562_v14 = vpack.c.bf16 %v456_v7, %v454_v6  ;;  %1141 = vmatpush.bf16.msra.mxu3 %v596_v8  ;;  %v2534_v3 = vld [vmem:[%s4201_s2 + $0x34] sm:$0xf0] }
  0x39   : > { %v518_v11 = vld [vmem:[%s2896_s26 + $0x340] sm:$0xff]  ;;  %v520_v12 = vld [vmem:[%s2896_s26 + $0x350] sm:$0xff]  ;;  %v578_v16 = vpack.c.bf16 %v488_v10, %v486_v9  ;;  %995 = vmatpush.bf16.msra.mxu0 %v546_v13  ;;  %v747_v4 = vld [vmem:[%s4202_s3 + $0x68] sm:$0xff]  ;;  %v3087_v10 = vor.u32 %v2534_v3, %v2284_v2 }
  0x3a   : > { %v418_v15 = vld [vmem:[%s2896_s26 + $0x20] sm:$0xff]  ;;  %v420_v17 = vld [vmem:[%s2896_s26 + $0x30] sm:$0xff]  ;;  %v594_v20 = vpack.c.bf16 %v520_v12, %v518_v11  ;;  %1044 = vmatpush.bf16.msra.mxu1 %v562_v14  ;;  %v2532_v5 = vld [vmem:[%s4201_s2 + $0x2c] sm:$0xf] }
  0x3b   : > { %v450_v18 = vld [vmem:[%s2896_s26 + $0x120] sm:$0xff]  ;;  %v452_v19 = vld [vmem:[%s2896_s26 + $0x130] sm:$0xff]  ;;  %v544_v27 = vpack.c.bf16 %v420_v17, %v418_v15  ;;  %1093 = vmatpush.bf16.msra.mxu2 %v578_v16  ;;  %v2286_v6 = vld [vmem:[%s4201_s2 + $0x38] sm:$0xf0] }
  0x3c   : > { %v1452_v21 = vld [vmem:[%s4204_s5 + $0x30] sm:$0xff]  ;;  %v482_v22 = vld [vmem:[%s2896_s26 + $0x220] sm:$0xff]  ;;  %v560_v28 = vpack.c.bf16 %v452_v19, %v450_v18  ;;  %1142 = vmatpush.bf16.msra.mxu3 %v594_v20  ;;  %v3089_v11 = vor.u32 %v2532_v5, %v2286_v6  ;;  %v743_v14 = vld [vmem:[%s4202_s3 + $0x48] sm:$0xff] }
  0x3d   : > { %v484_v23 = vld [vmem:[%s2896_s26 + $0x230] sm:$0xff]  ;;  %v514_v25 = vld [vmem:[%s2896_s26 + $0x320] sm:$0xff]  ;;  %1494 = vperm.xlu0 %2697, %v1452_v21   ;;  %1489 = vperm.xlu1 %2698, %v1451_v24   ;;  %v745_v15 = vld [vmem:[%s4202_s3 + $0x58] sm:$0xff] }
  0x3e   : > { %v516_v26 = vld [vmem:[%s2896_s26 + $0x330] sm:$0xff]  ;;  %v414_v30 = vld [vmem:[%s2896_s26] sm:$0xff]  ;;  %v576_v31 = vpack.c.bf16 %v484_v23, %v482_v22  ;;  %1499 = vperm.xlu2 %2699, %v1453_v29   ;;  %996 = vmatpush.bf16.msra.mxu0 %v544_v27  ;;  %v2300_v20 = vld [vmem:[%s4201_s2 + $0x48] sm:$0xf] }
  0x3f   : > { %v416_v32 = vld [vmem:[%s2896_s26 + $0x10] sm:$0xff]  ;;  %v446_v33 = vld [vmem:[%s2896_s26 + $0x100] sm:$0xff]  ;;  %v592_v35 = vpack.c.bf16 %v516_v26, %v514_v25  ;;  %1045 = vmatpush.bf16.msra.mxu1 %v560_v28  ;;  %v2538_v21 = vld [vmem:[%s4201_s2 + $0x54] sm:$0xf0] }
  0x40   : > { %v448_v34 = vld [vmem:[%s2896_s26 + $0x110] sm:$0xff]  ;;  %v478_v36 = vld [vmem:[%s2896_s26 + $0x200] sm:$0xff]  ;;  %v542_v41 = vpack.c.bf16 %v416_v32, %v414_v30  ;;  %1094 = vmatpush.bf16.msra.mxu2 %v576_v31  ;;  %v741_v22 = vld [vmem:[%s4202_s3 + $0x38] sm:$0xff]  ;;  %v3141_v28 = vor.u32 %v2538_v21, %v2300_v20 }
  0x41   : > { %v480_v37 = vld [vmem:[%s2896_s26 + $0x210] sm:$0xff]  ;;  %v510_v38 = vld [vmem:[%s2896_s26 + $0x300] sm:$0xff]  ;;  %v558_v42 = vpack.c.bf16 %v448_v34, %v446_v33  ;;  %1143 = vmatpush.bf16.msra.mxu3 %v592_v35  ;;  %v2536_v23 = vld [vmem:[%s4201_s2 + $0x4c] sm:$0xf] }
  0x42   : > { %v512_v39 = vld [vmem:[%s2896_s26 + $0x310] sm:$0xff]  ;;  %v2260_v40 = vld [vmem:[%s4201_s2] sm:$0xf]  ;;  %v2527_v44 = vld [vmem:[%s4201_s2 + $0x4] sm:$0xf]  ;;  %v574_v46 = vpack.c.bf16 %v480_v37, %v478_v36  ;;  %997 = vmatpush.bf16.msra.mxu0 %v542_v41 }
  0x43   : > { %v2529_v43 = vld [vmem:[%s4201_s2 + $0xc] sm:$0xf0]  ;;  %v2262_v45 = vld [vmem:[%s4201_s2 + $0x10] sm:$0xf0]  ;;  %v590_v49 = vpack.c.bf16 %v512_v39, %v510_v38  ;;  %1046 = vmatpush.bf16.msra.mxu1 %v558_v42  ;;  %v1450_v58 = vld [vmem:[%s4204_s5 + $0x20] sm:$0xff] }
  0x44   : > { %v1448_v53 = vld [vmem:[%s4204_s5 + $0x10] sm:$0xff]  ;;  %v3029_v54 = vor.u32 %v2529_v43, %v2260_v40  ;;  %v3031_v55 = vor.u32 %v2527_v44, %v2262_v45  ;;  %1095 = vmatpush.bf16.msra.mxu2 %v574_v46  ;;  %v1446_v59 = vld [vmem:[%s4204_s5] sm:$0xff]  ;;  %v2302_v24 = vld [vmem:[%s4201_s2 + $0x58] sm:$0xf0] }
  0x45   : > { %1479 = vperm.xlu0 %2697, %v1449_v50   ;;  %1144 = vmatpush.bf16.msra.mxu3 %v590_v49  ;;  %v2276_v62 = vld [vmem:[%s4201_s2 + $0x20] sm:$0xf]  ;;  %v2533_v63 = vld [vmem:[%s4201_s2 + $0x2c] sm:$0xf0]  ;;  %v2531_v0 = vld [vmem:[%s4201_s2 + $0x24] sm:$0xf]  ;;  %v3143_v29 = vor.u32 %v2536_v23, %v2302_v24 }
  0x46   : > { %1474 = vperm.xlu1 %2698, %v1448_v53   ;;  %998 = vmatmul.bf16.vlgmr.msra.gmra.mxu0 %v3029_v54  ;;  %v2278_v1 = vld [vmem:[%s4201_s2 + $0x30] sm:$0xf0]  ;;  %v746_v7 = vld [vmem:[%s4202_s3 + $0x60] sm:$0xff]  ;;  %v3083_v8 = vor.u32 %v2533_v63, %v2276_v62  ;;  %v2537_v17 = vld [vmem:[%s4201_s2 + $0x4c] sm:$0xf0] }
  0x47   : > { %1047 = vmatmul.bf16.vlgmr.msra.gmra.mxu1 %v3031_v55  ;;  %1096 = vmatmul.bf16.vlgmr.msra.gmra.mxu2 %v3033_v56  ;;  %v3085_v9 = vor.u32 %v2531_v0, %v2278_v1  ;;  %v748_v12 = vld [vmem:[%s4202_s3 + $0x70] sm:$0xff]  ;;  %v2292_v16 = vld [vmem:[%s4201_s2 + $0x40] sm:$0xf]  ;;  %v2535_v18 = vld [vmem:[%s4201_s2 + $0x44] sm:$0xf] }
  0x48   : > { %1484 = vperm.xlu2 %2699, %v1450_v58   ;;  %1145 = vmatmul.bf16.vlgmr.msra.gmra.mxu3 %v3035_v57  ;;  %v744_v13 = vld [vmem:[%s4202_s3 + $0x50] sm:$0xff]  ;;  %v3137_v26 = vor.u32 %v2537_v17, %v2292_v16  ;;  %v742_v30 = vld [vmem:[%s4202_s3 + $0x40] sm:$0xff]  ;;  %v737_v32 = vld [vmem:[%s4202_s3 + $0x18] sm:$0xff] }
  0x49   : > { %v2294_v19 = vld [vmem:[%s4201_s2 + $0x50] sm:$0xf0]  ;;  %v738_v31 = vld [vmem:[%s4202_s3 + $0x20] sm:$0xff]  ;;  %v739_v33 = vld [vmem:[%s4202_s3 + $0x28] sm:$0xff] }
  0x4a   : > { %v740_v25 = vld [vmem:[%s4202_s3 + $0x30] sm:$0xff]  ;;  %v3139_v27 = vor.u32 %v2535_v18, %v2294_v19  ;;  %v2308_v34 = vld [vmem:[%s4201_s2 + $0x60] sm:$0xf]  ;;  %v2539_v36 = vld [vmem:[%s4201_s2 + $0x64] sm:$0xf] }
  0x4b   : > { %v2541_v35 = vld [vmem:[%s4201_s2 + $0x6c] sm:$0xf0]  ;;  %v2310_v37 = vld [vmem:[%s4201_s2 + $0x70] sm:$0xf0]  ;;  %v2316_v38 = vld [vmem:[%s4201_s2 + $0x68] sm:$0xf] }
  0x4c   : > { %v2542_v39 = vld [vmem:[%s4201_s2 + $0x74] sm:$0xf0]  ;;  %v735_v40 = vld [vmem:[%s4202_s3 + $0x8] sm:$0xff]  ;;  %v2318_v42 = vld [vmem:[%s4201_s2 + $0x78] sm:$0xf0]  ;;  %v3191_v44 = vor.u32 %v2541_v35, %v2308_v34  ;;  %v3193_v45 = vor.u32 %v2539_v36, %v2310_v37 }
  0x4d   : > { %1464 = vperm.xlu0 %2697, %v1446_v59   ;;  %v2540_v41 = vld [vmem:[%s4201_s2 + $0x6c] sm:$0xf]  ;;  %v734_v43 = vld [vmem:[%s4202_s3] sm:$0xff]  ;;  %v3195_v46 = vor.u32 %v2542_v39, %v2316_v38  ;;  %v736_v48 = vld [vmem:[%s4202_s3 + $0x10] sm:$0xff] }
  0x4e   : > { %827 = vperm.xlu1 %2698, %v749_v60   ;;  %v3197_v47 = vor.u32 %v2540_v41, %v2318_v42  ;;  %v2324_v49 = vld [vmem:[%s4201_s2 + $0x80] sm:$0xf]  ;;  %v2545_v50 = vld [vmem:[%s4201_s2 + $0x8c] sm:$0xf0]  ;;  %v2543_v51 = vld [vmem:[%s4201_s2 + $0x84] sm:$0xf] }
  0x4f   : > { %v2326_v52 = vld [vmem:[%s4201_s2 + $0x90] sm:$0xf0]  ;;  %v2332_v53 = vld [vmem:[%s4201_s2 + $0x88] sm:$0xf]  ;;  %v2546_v58 = vld [vmem:[%s4201_s2 + $0x94] sm:$0xf0] }
  0x50   : > { %1469 = vperm.xlu2 %2699, %v1447_v61   ;;  %v2544_v59 = vld [vmem:[%s4201_s2 + $0x8c] sm:$0xf]  ;;  %v2334_v60 = vld [vmem:[%s4201_s2 + $0x98] sm:$0xf0]  ;;  %v3230_v61 = vor.u32 %v2545_v50, %v2324_v49  ;;  %v3232_v62 = vor.u32 %v2543_v51, %v2326_v52  ;;  %v3234_v63 = vor.u32 %v2546_v58, %v2332_v53  ;;  %v2549_v34 = vld [vmem:[%s4201_s2 + $0xac] sm:$0xf0] }
  0x51   : > { %v3236_v0 = vor.u32 %v2544_v59, %v2334_v60  ;;  %v443_v1 = vld [vmem:[%s2896_s26 + $0xe8] sm:$0xff]  ;;  %v445_v2 = vld [vmem:[%s2896_s26 + $0xf8] sm:$0xff]  ;;  %v2547_v35 = vld [vmem:[%s4201_s2 + $0xa4] sm:$0xf] }
  0x52   : > { %v475_v3 = vld [vmem:[%s2896_s26 + $0x1e8] sm:$0xff]  ;;  %v557_v5 = vpack.c.bf16 %v445_v2, %v443_v1  ;;  %v477_v6 = vld [vmem:[%s2896_s26 + $0x1f8] sm:$0xff]  ;;  %v2342_v36 = vld [vmem:[%s4201_s2 + $0xb0] sm:$0xf0] }
  0x53   : > { %v541_v16 = vld [vmem:[%s2896_s26 + $0x3f8] sm:$0xff]  ;;  %v439_v17 = vld [vmem:[%s2896_s26 + $0xc8] sm:$0xff] }
  0x54   : > { %1186 = vmatpush.bf16.msrb.mxu0 %v557_v5  ;;  %v441_v19 = vld [vmem:[%s2896_s26 + $0xd8] sm:$0xff]  ;;  %v471_v20 = vld [vmem:[%s2896_s26 + $0x1c8] sm:$0xff] }
  0x55   : > { %817 = vperm.xlu0 %2697, %v747_v4   ;;  %v473_v21 = vld [vmem:[%s2896_s26 + $0x1d8] sm:$0xff]  ;;  %v503_v24 = vld [vmem:[%s2896_s26 + $0x2c8] sm:$0xff] }
  0x56   : > { %812 = vperm.xlu1 %2698, %v746_v7   ;;  %1003 = vmatmul.bf16.gmra.mxu0 %v3083_v8  ;;  %v507_v7 = vld [vmem:[%s2896_s26 + $0x2e8] sm:$0xff]  ;;  %v571_v23 = vpack.c.bf16 %v473_v21, %v471_v20  ;;  %v2550_v39 = vld [vmem:[%s4201_s2 + $0xb4] sm:$0xf0] }
  0x57   : > { %1052 = vmatmul.bf16.gmra.mxu1 %v3085_v9  ;;  %1101 = vmatmul.bf16.gmra.mxu2 %v3087_v10  ;;  %v2348_v38 = vld [vmem:[%s4201_s2 + $0xa8] sm:$0xf]  ;;  %v437_v41 = vld [vmem:[%s2896_s26 + $0xb8] sm:$0xff] }
  0x58   : > { %822 = vperm.xlu2 %2699, %v748_v12   ;;  %1150 = vmatmul.bf16.gmra.mxu3 %v3089_v11  ;;  %v509_v12 = vld [vmem:[%s2896_s26 + $0x2f8] sm:$0xff]  ;;  %v467_v42 = vld [vmem:[%s2896_s26 + $0x1a8] sm:$0xff] }
  0x59   : > { %v469_v50 = vld [vmem:[%s2896_s26 + $0x1b8] sm:$0xff]  ;;  %v499_v51 = vld [vmem:[%s2896_s26 + $0x2a8] sm:$0xff] }
  0x5a   : > { %v501_v52 = vld [vmem:[%s2896_s26 + $0x2b8] sm:$0xff]  ;;  %v569_v58 = vpack.c.bf16 %v469_v50, %v467_v42  ;;  %v531_v60 = vld [vmem:[%s2896_s26 + $0x3a8] sm:$0xff] }
  0x5b   : > { %v585_v59 = vpack.c.bf16 %v501_v52, %v499_v51  ;;  %v533_v1 = vld [vmem:[%s2896_s26 + $0x3b8] sm:$0xff]  ;;  %v431_v2 = vld [vmem:[%s2896_s26 + $0x88] sm:$0xff] }
  0x5c   : > { %v433_v5 = vld [vmem:[%s2896_s26 + $0x98] sm:$0xff]  ;;  %v423_v42 = vld [vmem:[%s2896_s26 + $0x48] sm:$0xff] }
  0x5d   : > { %802 = vperm.xlu0 %2697, %v744_v13   ;;  %v573_v13 = vpack.c.bf16 %v477_v6, %v475_v3  ;;  %v601_v3 = vpack.c.bf16 %v533_v1, %v531_v60  ;;  %v463_v6 = vld [vmem:[%s2896_s26 + $0x188] sm:$0xff]  ;;  %v457_v50 = vld [vmem:[%s2896_s26 + $0x158] sm:$0xff] }
  0x5e   : > { %797 = vperm.xlu1 %2698, %v743_v14   ;;  %v589_v14 = vpack.c.bf16 %v509_v12, %v507_v7  ;;  %v465_v7 = vld [vmem:[%s2896_s26 + $0x198] sm:$0xff]  ;;  %v487_v52 = vld [vmem:[%s2896_s26 + $0x248] sm:$0xff] }
  0x5f   : > { %1235 = vmatpush.bf16.msrb.mxu1 %v573_v13  ;;  %v3300_v13 = vor.u32 %v2547_v35, %v2342_v36  ;;  %v567_v21 = vpack.c.bf16 %v465_v7, %v463_v6  ;;  %v461_v35 = vld [vmem:[%s2896_s26 + $0x178] sm:$0xff]  ;;  %v491_v36 = vld [vmem:[%s2896_s26 + $0x268] sm:$0xff]  ;;  %v2358_v6 = vld [vmem:[%s4201_s2 + $0xd0] sm:$0xf0] }
  0x60   : > { %807 = vperm.xlu2 %2699, %v745_v15   ;;  %v539_v15 = vld [vmem:[%s2896_s26 + $0x3e8] sm:$0xff]  ;;  %1284 = vmatpush.bf16.msrb.mxu2 %v589_v14  ;;  %v521_v1 = vld [vmem:[%s2896_s26 + $0x358] sm:$0xff] }
  0x61   : > { %v605_v18 = vpack.c.bf16 %v541_v16, %v539_v15  ;;  %v495_v14 = vld [vmem:[%s2896_s26 + $0x288] sm:$0xff]  ;;  %v497_v15 = vld [vmem:[%s2896_s26 + $0x298] sm:$0xff] }
  0x62   : > { %v527_v16 = vld [vmem:[%s2896_s26 + $0x388] sm:$0xff] }
  0x63   : > { %1333 = vmatpush.bf16.msrb.mxu3 %v605_v18  ;;  %1236 = vmatpush.bf16.msrb.mxu1 %v571_v23  ;;  %v551_v18 = vpack.c.bf16 %v433_v5, %v431_v2  ;;  %v2356_v2 = vld [vmem:[%s4201_s2 + $0xc0] sm:$0xf]  ;;  %v2551_v5 = vld [vmem:[%s4201_s2 + $0xc4] sm:$0xf] }
  0x65   : > { %787 = vperm.xlu0 %2697, %v741_v22   ;;  %v555_v22 = vpack.c.bf16 %v441_v19, %v439_v17  ;;  %v3305_v17 = vor.u32 %v2550_v39, %v2348_v38  ;;  %v529_v19 = vld [vmem:[%s2896_s26 + $0x398] sm:$0xff] }
  0x66   : > { %782 = vperm.xlu1 %2698, %v740_v25   ;;  %1008 = vmatmul.bf16.gmra.mxu0 %v3137_v26  ;;  %v505_v25 = vld [vmem:[%s2896_s26 + $0x2d8] sm:$0xff]  ;;  %v599_v23 = vpack.c.bf16 %v529_v19, %v527_v16  ;;  %v2364_v16 = vld [vmem:[%s4201_s2 + $0xc8] sm:$0xf] }
  0x67   : > { %1057 = vmatmul.bf16.gmra.mxu1 %v3139_v27  ;;  %1106 = vmatmul.bf16.gmra.mxu2 %v3141_v28  ;;  %v421_v19 = vld [vmem:[%s2896_s26 + $0x38] sm:$0xff] }
  0x68   : > { %792 = vperm.xlu2 %2699, %v742_v30   ;;  %1155 = vmatmul.bf16.gmra.mxu3 %v3143_v29  ;;  %v535_v30 = vld [vmem:[%s2896_s26 + $0x3c8] sm:$0xff] }
  0x69   : > { %1187 = vmatpush.bf16.msrb.mxu0 %v555_v22  ;;  %1237 = vmatpush.bf16.msrb.mxu1 %v569_v58  ;;  %v583_v22 = vpack.c.bf16 %v497_v15, %v495_v14  ;;  %v489_v58 = vld [vmem:[%s2896_s26 + $0x258] sm:$0xff] }
  0x6a   : > { %v579_v7 = vpack.c.bf16 %v489_v58, %v487_v52 }
  0x6d   : > { %772 = vperm.xlu0 %2697, %v738_v31   ;;  %v587_v31 = vpack.c.bf16 %v505_v25, %v503_v24  ;;  %1238 = vmatpush.bf16.msrb.mxu1 %v567_v21  ;;  %v451_v21 = vld [vmem:[%s2896_s26 + $0x128] sm:$0xff] }
  0x6e   : > { %767 = vperm.xlu1 %2698, %v737_v32   ;;  %v537_v32 = vld [vmem:[%s2896_s26 + $0x3d8] sm:$0xff] }
  0x6f   : > { %v603_v37 = vpack.c.bf16 %v537_v32, %v535_v30  ;;  %1285 = vmatpush.bf16.msrb.mxu2 %v587_v31  ;;  %v427_v30 = vld [vmem:[%s2896_s26 + $0x68] sm:$0xff]  ;;  %v429_v31 = vld [vmem:[%s2896_s26 + $0x78] sm:$0xff] }
  0x70   : > { %777 = vperm.xlu2 %2699, %v739_v33   ;;  %v2340_v33 = vld [vmem:[%s4201_s2 + $0xa0] sm:$0xf]  ;;  %v459_v32 = vld [vmem:[%s2896_s26 + $0x168] sm:$0xff] }
  0x71   : > { %1334 = vmatpush.bf16.msrb.mxu3 %v603_v37  ;;  %v3298_v12 = vor.u32 %v2549_v34, %v2340_v33  ;;  %v549_v34 = vpack.c.bf16 %v429_v31, %v427_v30  ;;  %v493_v37 = vld [vmem:[%s2896_s26 + $0x278] sm:$0xff]  ;;  %v565_v38 = vpack.c.bf16 %v461_v35, %v459_v32  ;;  %v483_v31 = vld [vmem:[%s2896_s26 + $0x228] sm:$0xff] }
  0x72   : > { %v581_v39 = vpack.c.bf16 %v493_v37, %v491_v36  ;;  %v453_v30 = vld [vmem:[%s2896_s26 + $0x138] sm:$0xff]  ;;  %v515_v36 = vld [vmem:[%s2896_s26 + $0x328] sm:$0xff] }
  0x73   : > { %1286 = vmatpush.bf16.msrb.mxu2 %v585_v59  ;;  %v519_v59 = vld [vmem:[%s2896_s26 + $0x348] sm:$0xff]  ;;  %1239 = vmatpush.bf16.msrb.mxu1 %v565_v38  ;;  %v485_v32 = vld [vmem:[%s2896_s26 + $0x238] sm:$0xff]  ;;  %v561_v35 = vpack.c.bf16 %v453_v30, %v451_v21 }
  0x74   : > { %v595_v14 = vpack.c.bf16 %v521_v1, %v519_v59  ;;  %v517_v37 = vld [vmem:[%s2896_s26 + $0x338] sm:$0xff] }
  0x75   : > { %757 = vperm.xlu0 %2697, %v735_v40   ;;  %v435_v40 = vld [vmem:[%s2896_s26 + $0xa8] sm:$0xff]  ;;  %1335 = vmatpush.bf16.msrb.mxu3 %v601_v3  ;;  %v2553_v3 = vld [vmem:[%s4201_s2 + $0xcc] sm:$0xf0]  ;;  %v449_v59 = vld [vmem:[%s2896_s26 + $0x118] sm:$0xff] }
  0x76   : > { %752 = vperm.xlu1 %2698, %v734_v43   ;;  %1013 = vmatmul.bf16.gmra.mxu0 %v3191_v44  ;;  %v2548_v43 = vld [vmem:[%s4201_s2 + $0xac] sm:$0xf]  ;;  %v553_v49 = vpack.c.bf16 %v437_v41, %v435_v40  ;;  %v525_v41 = vld [vmem:[%s2896_s26 + $0x378] sm:$0xff] }
  0x77   : > { %1062 = vmatmul.bf16.gmra.mxu1 %v3193_v45  ;;  %1111 = vmatmul.bf16.gmra.mxu2 %v3195_v46  ;;  %v523_v40 = vld [vmem:[%s2896_s26 + $0x368] sm:$0xff]  ;;  %v481_v1 = vld [vmem:[%s2896_s26 + $0x218] sm:$0xff] }
  0x78   : > { %762 = vperm.xlu2 %2699, %v736_v48   ;;  %1160 = vmatmul.bf16.gmra.mxu3 %v3197_v47  ;;  %v2350_v48 = vld [vmem:[%s4201_s2 + $0xb8] sm:$0xf0] }
  0x79   : > { %1188 = vmatpush.bf16.msrb.mxu0 %v553_v49  ;;  %v3308_v20 = vor.u32 %v2548_v43, %v2350_v48  ;;  %1287 = vmatpush.bf16.msrb.mxu2 %v583_v22  ;;  %v597_v43 = vpack.c.bf16 %v525_v41, %v523_v40  ;;  %v425_v48 = vld [vmem:[%s2896_s26 + $0x58] sm:$0xff]  ;;  %v455_v49 = vld [vmem:[%s2896_s26 + $0x148] sm:$0xff]  ;;  %v577_v41 = vpack.c.bf16 %v485_v32, %v483_v31  ;;  %v2557_v31 = vld [vmem:[%s4201_s2 + $0xec] sm:$0xf0] }
  0x7a   : > { %1336 = vmatpush.bf16.msrb.mxu3 %v599_v23  ;;  %v547_v51 = vpack.c.bf16 %v425_v48, %v423_v42  ;;  %v563_v60 = vpack.c.bf16 %v457_v50, %v455_v49  ;;  %v2366_v40 = vld [vmem:[%s4201_s2 + $0xd8] sm:$0xf0]  ;;  %v593_v42 = vpack.c.bf16 %v517_v37, %v515_v36  ;;  %v3376_v48 = vor.u32 %v2551_v5, %v2358_v6  ;;  %v415_v49 = vld [vmem:[%s2896_s26 + $0x8] sm:$0xff]  ;;  %v2555_v32 = vld [vmem:[%s4201_s2 + $0xe4] sm:$0xf] }
  0x7b   : > { %v417_v50 = vld [vmem:[%s2896_s26 + $0x18] sm:$0xff] }
  0x7c   : > { %v3245_v4 = vpop.permute.xlu2 %1519  ;;  %1240 = vmatpush.bf16.msrb.mxu1 %v563_v60  ;;  %v543_v58 = vpack.c.bf16 %v417_v50, %v415_v49  ;;  %v479_v60 = vld [vmem:[%s2896_s26 + $0x208] sm:$0xff]  ;;  %v2558_v36 = vld [vmem:[%s4201_s2 + $0xf4] sm:$0xf0] }
  0x7d   : > { %4226 = vst [vmem:[#allocation6_spill] sm:$0xff] %v3245_v4  ;;  %1189 = vmatpush.bf16.msrb.mxu0 %v551_v18  ;;  %1288 = vmatpush.bf16.msrb.mxu2 %v581_v39  ;;  %v419_v18 = vld [vmem:[%s2896_s26 + $0x28] sm:$0xff] }
  0x7e   : > { %1337 = vmatpush.bf16.msrb.mxu3 %v597_v43  ;;  %v545_v23 = vpack.c.bf16 %v421_v19, %v419_v18  ;;  %v2552_v39 = vld [vmem:[%s4201_s2 + $0xcc] sm:$0xf]  ;;  %v3374_v43 = vor.u32 %v2553_v3, %v2356_v2  ;;  %v513_v19 = vld [vmem:[%s2896_s26 + $0x318] sm:$0xff]  ;;  %v575_v2 = vpack.c.bf16 %v481_v1, %v479_v60 }
  0x7f   : > { %v511_v18 = vld [vmem:[%s2896_s26 + $0x308] sm:$0xff] }
  0x80   : > { %1241 = vmatpush.bf16.msrb.mxu1 %v561_v35  ;;  %v591_v3 = vpack.c.bf16 %v513_v19, %v511_v18  ;;  %v2380_v35 = vld [vmem:[%s4201_s2 + $0xe8] sm:$0xf] }
  0x81   : > { %1190 = vmatpush.bf16.msrb.mxu0 %v549_v34  ;;  %v2554_v34 = vld [vmem:[%s4201_s2 + $0xd4] sm:$0xf0]  ;;  %1289 = vmatpush.bf16.msrb.mxu2 %v579_v7  ;;  %v3386_v7 = vor.u32 %v2552_v39, %v2366_v40  ;;  %v2556_v39 = vld [vmem:[%s4201_s2 + $0xec] sm:$0xf]  ;;  %v2382_v40 = vld [vmem:[%s4201_s2 + $0xf8] sm:$0xf0]  ;;  %v3434_v49 = vor.u32 %v2558_v36, %v2380_v35 }
  0x82   : > { %1338 = vmatpush.bf16.msrb.mxu3 %v595_v14  ;;  %v3381_v52 = vor.u32 %v2554_v34, %v2364_v16  ;;  %v2374_v34 = vld [vmem:[%s4201_s2 + $0xf0] sm:$0xf0]  ;;  %v3436_v50 = vor.u32 %v2556_v39, %v2382_v40 }
  0x85   : > { %1191 = vmatpush.bf16.msrb.mxu0 %v547_v51  ;;  %v447_v51 = vld [vmem:[%s2896_s26 + $0x108] sm:$0xff]  ;;  %1290 = vmatpush.bf16.msrb.mxu2 %v577_v41 }
  0x86   : > { %1018 = vmatmul.bf16.gmra.mxu0 %v3230_v61  ;;  %v559_v14 = vpack.c.bf16 %v449_v59, %v447_v51  ;;  %1339 = vmatpush.bf16.msrb.mxu3 %v593_v42  ;;  %v3432_v42 = vor.u32 %v2555_v32, %v2374_v34 }
  0x87   : > { %1067 = vmatmul.bf16.gmra.mxu1 %v3232_v62  ;;  %1116 = vmatmul.bf16.gmra.mxu2 %v3234_v63 }
  0x88   : > { %1165 = vmatmul.bf16.gmra.mxu3 %v3236_v0  ;;  %1242 = vmatpush.bf16.msrb.mxu1 %v559_v14 }
  0x89   : > { %1192 = vmatpush.bf16.msrb.mxu0 %v545_v23  ;;  %1291 = vmatpush.bf16.msrb.mxu2 %v575_v2  ;;  %v2372_v23 = vld [vmem:[%s4201_s2 + $0xe0] sm:$0xf] }
  0x8a   : > { %1340 = vmatpush.bf16.msrb.mxu3 %v591_v3  ;;  %v3430_v41 = vor.u32 %v2557_v31, %v2372_v23 }
  0x8d   : > { %1193 = vmatpush.bf16.msrb.mxu0 %v543_v58 }
  0x90   : > { %v3290_v53 = vpop.permute.xlu2 %1514 }
  0x91   : > { %4227 = vst [vmem:[#allocation7_spill] sm:$0xff] %v3290_v53 }
  0x93   : > { %v3312_v24 = vpop.permute.xlu0 %1539 }
  0x94   : > { %4228 = vst [vmem:[#allocation8_spill] sm:$0xff] %v3312_v24  ;;  %v3314_v25 = vpop.permute.xlu1 %1529 }
  0x95   : > { %4229 = vst [vmem:[#allocation9_spill] sm:$0xff] %v3314_v25 }
  0x96   : > { %1023 = vmatmul.bf16.gmra.mxu0 %v3298_v12 }
  0x97   : > { %1072 = vmatmul.bf16.gmra.mxu1 %v3300_v13  ;;  %1121 = vmatmul.bf16.gmra.mxu2 %v3305_v17 }
  0x98   : > { %1170 = vmatmul.bf16.gmra.mxu3 %v3308_v20  ;;  %v3321_v33 = vpop.permute.xlu2 %1499 }
  0x99   : > { %4230 = vst [vmem:[#allocation10_spill] sm:$0xff] %v3321_v33 }
  0x9b   : > { %v3348_v15 = vpop.permute.xlu0 %1534 }
  0x9c   : > { %4231 = vst [vmem:[#allocation11_spill] sm:$0xff] %v3348_v15  ;;  %v3356_v22 = vpop.permute.xlu1 %1524 }
  0x9d   : > { %4232 = vst [vmem:[#allocation12_spill] sm:$0xff] %v3356_v22 }
  0xa2   : > { %v3366_v38 = vpop.permute.xlu2 %1484 }
  0xa3   : > { %4233 = vst [vmem:[#allocation13_spill] sm:$0xff] %v3366_v38  ;;  %v3392_v5 = vpop.permute.xlu0 %1509 }
  0xa4   : > { %4234 = vst [vmem:[#allocation14_spill] sm:$0xff] %v3392_v5 }
  0xa6   : > { %1028 = vmatmul.bf16.gmra.mxu0 %v3374_v43 }
  0xa7   : > { %1077 = vmatmul.bf16.gmra.mxu1 %v3376_v48  ;;  %1126 = vmatmul.bf16.gmra.mxu2 %v3381_v52  ;;  %v3395_v6 = vpop.permute.xlu1 %1504 }
  0xa8   : > { %4235 = vst [vmem:[#allocation15_spill] sm:$0xff] %v3395_v6  ;;  %1175 = vmatmul.bf16.gmra.mxu3 %v3386_v7 }
  0xaa   : > { %v3398_v16 = vpop.permute.xlu2 %1469 }
  0xab   : > { %4236 = vst [vmem:[#allocation16_spill] sm:$0xff] %v3398_v16  ;;  %v2560_v16 = vld [vmem:[%s4203_s4 + $0xc] sm:$0xf] }
  0xaf   : > { %v3400_v21 = vpop.permute.xlu0 %1494  ;;  %v3405_v30 = vpop.permute.xlu1 %1489 }
  0xb0   : > { %4237 = vst [vmem:[#allocation17_spill] sm:$0xff] %v3400_v21 }
  0xb1   : > { %4238 = vst [vmem:[#allocation18_spill] sm:$0xff] %v3405_v30 }
  0xb2   : > { %v3422_v37 = vpop.permute.xlu2 %822 }
  0xb6   : > { %1033 = vmatmul.bf16.gmra.mxu0 %v3430_v41 }
  0xb7   : > { %1082 = vmatmul.bf16.gmra.mxu1 %v3432_v42  ;;  %v3440_v51 = vpop.permute.xlu0 %1479  ;;  %1131 = vmatmul.bf16.gmra.mxu2 %v3434_v49 }
  0xb8   : > { %4239 = vst [vmem:[#allocation19_spill] sm:$0xff] %v3440_v51  ;;  %v3443_v58 = vpop.permute.xlu1 %1474  ;;  %1180 = vmatmul.bf16.gmra.mxu3 %v3436_v50 }
  0xb9   : > { %4240 = vst [vmem:[#allocation20_spill] sm:$0xff] %v3443_v58 }
  0xba   : > { %v3446_v59 = vpop.permute.xlu2 %807 }
  0xbb   : > { %4241 = vst [vmem:[#allocation21_spill] sm:$0xff] %v3446_v59 }
  0xbf   : > { %v3448_v60 = vpop.permute.xlu0 %1464 }
  0xc0   : > { %4242 = vst [vmem:[#allocation22_spill] sm:$0xff] %v3448_v60  ;;  %v3450_v1 = vpop.permute.xlu1 %827 }
  0xc1   : > { %4243 = vst [vmem:[#allocation23_spill] sm:$0xff] %v3450_v1 }
  0xc2   : > { %v3452_v14 = vpop.permute.xlu2 %792 }
  0xc3   : > { %4244 = vst [vmem:[#allocation24_spill] sm:$0xff] %v3452_v14  ;;  %v999_v18 = vpop.f32.mrf.mxu0 }
  0xc4   : > { %v1048_v19 = vpop.f32.mrf.mxu1 }
  0xc6   : > { %1194 = vmatmul.bf16.vlgmr.msrb.gmra.mxu0 %v3029_v54 }
  0xc7   : > { %1243 = vmatmul.bf16.vlgmr.msrb.gmra.mxu1 %v3031_v55  ;;  %v3456_v2 = vpop.permute.xlu0 %817  ;;  %1292 = vmatmul.bf16.vlgmr.msrb.gmra.mxu2 %v3033_v56 }
  0xc8   : > { %4245 = vst [vmem:[#allocation25_spill] sm:$0xff] %v3456_v2  ;;  %v3459_v3 = vpop.permute.xlu1 %812  ;;  %1341 = vmatmul.bf16.vlgmr.msrb.gmra.mxu3 %v3035_v57 }
  0xc9   : > { %4246 = vst [vmem:[#allocation26_spill] sm:$0xff] %v3459_v3 }
  0xca   : > { %v3462_v23 = vpop.permute.xlu2 %777  ;;  %v1097_v31 = vpop.f32.mrf.mxu2 }
  0xcb   : > { %v1146_v32 = vpop.f32.mrf.mxu3  ;;  %v1001_v34 = vpop.f32.mrf.mxu0 }
  0xcc   : > { %v1050_v35 = vpop.f32.mrf.mxu1 }
  0xcf   : > { %v3464_v36 = vpop.permute.xlu0 %802 }
  0xd0   : > { %4247 = vst [vmem:[#allocation27_spill] sm:$0xff] %v3464_v36  ;;  %v3466_v39 = vpop.permute.xlu1 %797 }
  0xd2   : > { %v3468_v54 = vpop.permute.xlu2 %762  ;;  %v1099_v55 = vpop.f32.mrf.mxu2 }
  0xd3   : > { %v1148_v40 = vpop.f32.mrf.mxu3  ;;  %v1004_v5 = vpop.f32.mrf.mxu0 }
  0xd4   : > { %v1053_v56 = vpop.f32.mrf.mxu1  ;;  %v1005_v4 = vadd.f32 %v1004_v5, %v3468_v54 }
  0xd6   : > { %1199 = vmatmul.bf16.gmra.mxu0 %v3083_v8  ;;  %v1054_v53 = vadd.f32 %v1053_v56, %v1005_v4 }
  0xd7   : > { %1248 = vmatmul.bf16.gmra.mxu1 %v3085_v9  ;;  %v3473_v57 = vpop.permute.xlu0 %787  ;;  %1297 = vmatmul.bf16.gmra.mxu2 %v3087_v10 }
  0xd8   : > { %v3476_v24 = vpop.permute.xlu1 %782  ;;  %1346 = vmatmul.bf16.gmra.mxu3 %v3089_v11 }
  0xda   : > { %v1102_v25 = vpop.f32.mrf.mxu2 }
  0xdb   : > { %v1103_v22 = vadd.f32 %v1102_v25, %v1054_v53  ;;  %v1151_v15 = vpop.f32.mrf.mxu3  ;;  %v1006_v6 = vpop.f32.mrf.mxu0 }
  0xdc   : > { %v1055_v33 = vpop.f32.mrf.mxu1 }
  0xdd   : > { %v3479_v21 = vadd.f32 %v1151_v15, %v1103_v22 }
  0xdf   : > { %v3481_v5 = vpop.permute.xlu0 %772 }
  0xe0   : > { %v3483_v8 = vpop.permute.xlu1 %767 }
  0xe1   : > { %v1007_v9 = vadd.f32 %v1006_v6, %v3483_v8 }
  0xe2   : > { %v1104_v56 = vpop.f32.mrf.mxu2 }
  0xe3   : > { %v1056_v4 = vadd.f32 %v1055_v33, %v1007_v9  ;;  %v1153_v10 = vpop.f32.mrf.mxu3  ;;  %v1009_v30 = vpop.f32.mrf.mxu0 }
  0xe4   : > { %v1010_v11 = vadd.f32 %v1009_v30, %v3481_v5  ;;  %v1058_v51 = vpop.f32.mrf.mxu1 }
  0xe5   : > { %v1105_v38 = vadd.f32 %v1104_v56, %v1056_v4 }
  0xe6   : > { %v1059_v25 = vadd.f32 %v1058_v51, %v1010_v11  ;;  %1204 = vmatmul.bf16.gmra.mxu0 %v3137_v26 }
  0xe7   : > { %v3487_v53 = vadd.f32 %v1153_v10, %v1105_v38  ;;  %1253 = vmatmul.bf16.gmra.mxu1 %v3139_v27  ;;  %v3491_v15 = vpop.permute.xlu0 %757  ;;  %1302 = vmatmul.bf16.gmra.mxu2 %v3141_v28 }
  0xe8   : > { %v1002_v33 = vadd.f32 %v1001_v34, %v3491_v15  ;;  %v3495_v22 = vpop.permute.xlu1 %752  ;;  %1351 = vmatmul.bf16.gmra.mxu3 %v3143_v29 }
  0xe9   : > { %v1000_v6 = vadd.f32 %v999_v18, %v3495_v22 }
  0xea   : > { %v1051_v30 = vadd.f32 %v1050_v35, %v1002_v33  ;;  %v1107_v9 = vpop.f32.mrf.mxu2 }
  0xeb   : > { %v1049_v38 = vadd.f32 %v1048_v19, %v1000_v6  ;;  %v1108_v4 = vadd.f32 %v1107_v9, %v1059_v25  ;;  %v1156_v26 = vpop.f32.mrf.mxu3  ;;  %v1011_v56 = vpop.f32.mrf.mxu0 }
  0xec   : > { %v1100_v51 = vadd.f32 %v1099_v55, %v1051_v30  ;;  %v1012_v10 = vadd.f32 %v1011_v56, %v3462_v23  ;;  %v1060_v11 = vpop.f32.mrf.mxu1 }
  0xed   : > { %v1098_v27 = vadd.f32 %v1097_v31, %v1049_v38  ;;  %v3500_v28 = vadd.f32 %v1156_v26, %v1108_v4 }
  0xee   : > { %v3502_v34 = vadd.f32 %v1148_v40, %v1100_v51  ;;  %v1061_v58 = vadd.f32 %v1060_v11, %v1012_v10  ;;  %v620_v11 = vld [vmem:[%s3524_s17 + $0x70] sm:$0xff] }
  0xef   : > { %v3504_v29 = vadd.f32 %v1146_v32, %v1098_v27 }
  0xf2   : > { %v1109_v18 = vpop.f32.mrf.mxu2 }
  0xf3   : > { %v1110_v35 = vadd.f32 %v1109_v18, %v1061_v58  ;;  %v1158_v19 = vpop.f32.mrf.mxu3  ;;  %v1014_v33 = vpop.f32.mrf.mxu0  ;;  %v621_v18 = vld [vmem:[%s3524_s17 + $0x78] sm:$0xff] }
  0xf4   : > { %v1015_v55 = vadd.f32 %v1014_v33, %v3476_v24  ;;  %v1063_v25 = vpop.f32.mrf.mxu1  ;;  %v637_v33 = vld [vmem:[%s3524_s17 + $0xf8] sm:$0xff] }
  0xf5   : > { %v3507_v31 = vadd.f32 %v1158_v19, %v1110_v35  ;;  %v636_v35 = vld [vmem:[%s3524_s17 + $0xf0] sm:$0xff]  ;;  %v677_v19 = vpack.c.bf16 %v621_v18, %v620_v11  ;;  %v666_v18 = vld [vmem:[%s3524_s17 + $0x1e0] sm:$0xff] }
  0xf6   : > { %v1064_v6 = vadd.f32 %v1063_v25, %v1015_v55  ;;  %1209 = vmatmul.bf16.gmra.mxu0 %v3191_v44  ;;  %v652_v55 = vld [vmem:[%s3524_s17 + $0x170] sm:$0xff]  ;;  %v653_v25 = vld [vmem:[%s3524_s17 + $0x178] sm:$0xff] }
  0xf7   : > { %1258 = vmatmul.bf16.gmra.mxu1 %v3193_v45  ;;  %1307 = vmatmul.bf16.gmra.mxu2 %v3195_v46 }
  0xf8   : > { %1356 = vmatmul.bf16.gmra.mxu3 %v3197_v47  ;;  %1702 = vmatpush.bf16.msra.mxu0 %v677_v19 }
  0xfa   : > { %v1112_v32 = vpop.f32.mrf.mxu2 }
  0xfb   : > { %v1113_v58 = vadd.f32 %v1112_v32, %v1064_v6  ;;  %v1161_v40 = vpop.f32.mrf.mxu3  ;;  %v1016_v30 = vpop.f32.mrf.mxu0  ;;  %v685_v6 = vpack.c.bf16 %v637_v33, %v636_v35  ;;  %v693_v32 = vpack.c.bf16 %v653_v25, %v652_v55  ;;  %v616_v33 = vld [vmem:[%s3524_s17 + $0x50] sm:$0xff]  ;;  %v617_v55 = vld [vmem:[%s3524_s17 + $0x58] sm:$0xff] }
  0xfc   : > { %v1017_v38 = vadd.f32 %v1016_v30, %v3473_v57  ;;  %v1065_v9 = vpop.f32.mrf.mxu1  ;;  %v619_v30 = vld [vmem:[%s3524_s17 + $0x68] sm:$0xff]  ;;  %v632_v25 = vld [vmem:[%s3524_s17 + $0xd0] sm:$0xff] }
  0xfd   : > { %v3518_v51 = vadd.f32 %v1161_v40, %v1113_v58  ;;  %1751 = vmatpush.bf16.msra.mxu1 %v685_v6  ;;  %1800 = vmatpush.bf16.msra.mxu2 %v693_v32  ;;  %v675_v6 = vpack.c.bf16 %v617_v55, %v616_v33  ;;  %v633_v32 = vld [vmem:[%s3524_s17 + $0xd8] sm:$0xff] }
  0xfe   : > { %v1066_v44 = vadd.f32 %v1065_v9, %v1017_v38  ;;  %v634_v38 = vld [vmem:[%s3524_s17 + $0xe0] sm:$0xff] }
 0x102   : > { %v1114_v45 = vpop.f32.mrf.mxu2 }
 0x103   : > { %v1115_v4 = vadd.f32 %v1114_v45, %v1066_v44  ;;  %v1163_v46 = vpop.f32.mrf.mxu3  ;;  %v1019_v26 = vpop.f32.mrf.mxu0 }
 0x104   : > { %v1020_v47 = vadd.f32 %v1019_v26, %v3452_v14  ;;  %v1068_v56 = vpop.f32.mrf.mxu1  ;;  %v651_v26 = vld [vmem:[%s3524_s17 + $0x168] sm:$0xff] }
 0x105   : > { %v3527_v27 = vadd.f32 %v1163_v46, %v1115_v4  ;;  %v635_v4 = vld [vmem:[%s3524_s17 + $0xe8] sm:$0xff]  ;;  %v650_v46 = vld [vmem:[%s3524_s17 + $0x160] sm:$0xff] }
 0x106   : > { %v1069_v10 = vadd.f32 %v1068_v56, %v1020_v47  ;;  %1214 = vmatmul.bf16.gmra.mxu0 %v3230_v61  ;;  %v668_v61 = vld [vmem:[%s3524_s17 + $0x1f0] sm:$0xff]  ;;  %v684_v56 = vpack.c.bf16 %v635_v4, %v634_v38  ;;  %v692_v11 = vpack.c.bf16 %v651_v26, %v650_v46  ;;  %v630_v4 = vld [vmem:[%s3524_s17 + $0xc0] sm:$0xff] }
 0x107   : > { %1263 = vmatmul.bf16.gmra.mxu1 %v3232_v62  ;;  %1312 = vmatmul.bf16.gmra.mxu2 %v3234_v63  ;;  %v669_v62 = vld [vmem:[%s3524_s17 + $0x1f8] sm:$0xff]  ;;  %v618_v63 = vld [vmem:[%s3524_s17 + $0x60] sm:$0xff] }
 0x108   : > { %1361 = vmatmul.bf16.gmra.mxu3 %v3236_v0  ;;  %v701_v58 = vpack.c.bf16 %v669_v62, %v668_v61  ;;  %v676_v45 = vpack.c.bf16 %v619_v30, %v618_v63  ;;  %1752 = vmatpush.bf16.msra.mxu1 %v684_v56  ;;  %v648_v61 = vld [vmem:[%s3524_s17 + $0x150] sm:$0xff]  ;;  %v649_v62 = vld [vmem:[%s3524_s17 + $0x158] sm:$0xff] }
 0x109   : > { %1801 = vmatpush.bf16.msra.mxu2 %v692_v11  ;;  %v664_v63 = vld [vmem:[%s3524_s17 + $0x1d0] sm:$0xff]  ;;  %v665_v30 = vld [vmem:[%s3524_s17 + $0x1d8] sm:$0xff]  ;;  %v631_v11 = vld [vmem:[%s3524_s17 + $0xc8] sm:$0xff] }
 0x10a   : > { %v1117_v40 = vpop.f32.mrf.mxu2  ;;  %1849 = vmatpush.bf16.msra.mxu3 %v701_v58  ;;  %1703 = vmatpush.bf16.msra.mxu0 %v676_v45  ;;  %v683_v58 = vpack.c.bf16 %v633_v32, %v632_v25  ;;  %v699_v38 = vpack.c.bf16 %v665_v30, %v664_v63  ;;  %v615_v45 = vld [vmem:[%s3524_s17 + $0x48] sm:$0xff]  ;;  %v682_v33 = vpack.c.bf16 %v631_v11, %v630_v4  ;;  %v662_v25 = vld [vmem:[%s3524_s17 + $0x1c0] sm:$0xff]  ;;  %v629_v63 = vld [vmem:[%s3524_s17 + $0xb8] sm:$0xff] }
 0x10b   : > { %v1118_v9 = vadd.f32 %v1117_v40, %v1069_v10  ;;  %v1166_v44 = vpop.f32.mrf.mxu3  ;;  %v3544_v0 = vpop.f32.mrf.mxu0  ;;  %v667_v10 = vld [vmem:[%s3524_s17 + $0x1e8] sm:$0xff]  ;;  %v691_v40 = vpack.c.bf16 %v649_v62, %v648_v61  ;;  %v612_v61 = vld [vmem:[%s3524_s17 + $0x30] sm:$0xff]  ;;  %v613_v62 = vld [vmem:[%s3524_s17 + $0x38] sm:$0xff] }
 0x10c   : > { %v3549_v47 = vpop.f32.mrf.mxu1  ;;  %v700_v19 = vpack.c.bf16 %v667_v10, %v666_v18  ;;  %1753 = vmatpush.bf16.msra.mxu1 %v683_v58  ;;  %v646_v18 = vld [vmem:[%s3524_s17 + $0x140] sm:$0xff]  ;;  %v647_v10 = vld [vmem:[%s3524_s17 + $0x148] sm:$0xff]  ;;  %v628_v58 = vld [vmem:[%s3524_s17 + $0xb0] sm:$0xff] }
 0x10d   : > { %v3553_v35 = vadd.f32 %v1166_v44, %v1118_v9  ;;  %1802 = vmatpush.bf16.msra.mxu2 %v691_v40  ;;  %v614_v44 = vld [vmem:[%s3524_s17 + $0x40] sm:$0xff]  ;;  %v690_v55 = vpack.c.bf16 %v647_v10, %v646_v18  ;;  %v673_v40 = vpack.c.bf16 %v613_v62, %v612_v61  ;;  %v644_v30 = vld [vmem:[%s3524_s17 + $0x130] sm:$0xff]  ;;  %v611_v11 = vld [vmem:[%s3524_s17 + $0x28] sm:$0xff] }
 0x10e   : > { %1850 = vmatpush.bf16.msra.mxu3 %v700_v19  ;;  %1704 = vmatpush.bf16.msra.mxu0 %v675_v6  ;;  %v674_v56 = vpack.c.bf16 %v615_v45, %v614_v44  ;;  %v663_v6 = vld [vmem:[%s3524_s17 + $0x1c8] sm:$0xff]  ;;  %v660_v44 = vld [vmem:[%s3524_s17 + $0x1b0] sm:$0xff]  ;;  %v661_v45 = vld [vmem:[%s3524_s17 + $0x1b8] sm:$0xff] }
 0x10f   : > { %v698_v32 = vpack.c.bf16 %v663_v6, %v662_v25  ;;  %v626_v18 = vld [vmem:[%s3524_s17 + $0xa0] sm:$0xff]  ;;  %v643_v6 = vld [vmem:[%s3524_s17 + $0x128] sm:$0xff] }
 0x110   : > { %1754 = vmatpush.bf16.msra.mxu1 %v682_v33  ;;  %v642_v25 = vld [vmem:[%s3524_s17 + $0x120] sm:$0xff] }
 0x111   : > { %1803 = vmatpush.bf16.msra.mxu2 %v690_v55  ;;  %v627_v55 = vld [vmem:[%s3524_s17 + $0xa8] sm:$0xff]  ;;  %v688_v62 = vpack.c.bf16 %v643_v6, %v642_v25  ;;  %v606_v6 = vld [vmem:[%s3524_s17] sm:$0xff] }
 0x112   : > { %v3563_v9 = vpop.f32.mrf.mxu2  ;;  %1851 = vmatpush.bf16.msra.mxu3 %v699_v38  ;;  %1705 = vmatpush.bf16.msra.mxu0 %v674_v56  ;;  %v645_v38 = vld [vmem:[%s3524_s17 + $0x138] sm:$0xff]  ;;  %v610_v56 = vld [vmem:[%s3524_s17 + $0x20] sm:$0xff]  ;;  %v680_v61 = vpack.c.bf16 %v627_v55, %v626_v18 }
 0x113   : > { %v3568_v46 = vpop.f32.mrf.mxu3  ;;  %v3570_v26 = vpop.f32.mrf.mxu0  ;;  %v672_v33 = vpack.c.bf16 %v611_v11, %v610_v56  ;;  %v640_v56 = vld [vmem:[%s3524_s17 + $0x110] sm:$0xff] }
 0x114   : > { %v3575_v19 = vpop.f32.mrf.mxu1 }
 0x116   : > { %1219 = vmatmul.bf16.gmra.mxu0 %v3298_v12  ;;  %v681_v12 = vpack.c.bf16 %v629_v63, %v628_v58  ;;  %1852 = vmatpush.bf16.msra.mxu3 %v698_v32  ;;  %v658_v58 = vld [vmem:[%s3524_s17 + $0x1a0] sm:$0xff] }
 0x117   : > { %1268 = vmatmul.bf16.gmra.mxu1 %v3300_v13  ;;  %1317 = vmatmul.bf16.gmra.mxu2 %v3305_v17  ;;  %v689_v13 = vpack.c.bf16 %v645_v38, %v644_v30  ;;  %v697_v17 = vpack.c.bf16 %v661_v45, %v660_v44  ;;  %v608_v30 = vld [vmem:[%s3524_s17 + $0x10] sm:$0xff]  ;;  %v609_v38 = vld [vmem:[%s3524_s17 + $0x18] sm:$0xff] }
 0x118   : > { %1366 = vmatmul.bf16.gmra.mxu3 %v3308_v20  ;;  %1706 = vmatpush.bf16.msra.mxu0 %v673_v40  ;;  %v659_v40 = vld [vmem:[%s3524_s17 + $0x1a8] sm:$0xff]  ;;  %v671_v44 = vpack.c.bf16 %v609_v38, %v608_v30  ;;  %v625_v45 = vld [vmem:[%s3524_s17 + $0x98] sm:$0xff] }
 0x119   : > { %1755 = vmatpush.bf16.msra.mxu1 %v681_v12  ;;  %1804 = vmatpush.bf16.msra.mxu2 %v689_v13  ;;  %v696_v63 = vpack.c.bf16 %v659_v40, %v658_v58  ;;  %v624_v12 = vld [vmem:[%s3524_s17 + $0x90] sm:$0xff]  ;;  %v641_v13 = vld [vmem:[%s3524_s17 + $0x118] sm:$0xff]  ;;  %v622_v58 = vld [vmem:[%s3524_s17 + $0x80] sm:$0xff] }
 0x11a   : > { %v3591_v4 = vpop.f32.mrf.mxu2  ;;  %1853 = vmatpush.bf16.msra.mxu3 %v697_v17  ;;  %v679_v11 = vpack.c.bf16 %v625_v45, %v624_v12  ;;  %v687_v18 = vpack.c.bf16 %v641_v13, %v640_v56  ;;  %v656_v17 = vld [vmem:[%s3524_s17 + $0x190] sm:$0xff]  ;;  %v623_v38 = vld [vmem:[%s3524_s17 + $0x88] sm:$0xff]  ;;  %v638_v12 = vld [vmem:[%s3524_s17 + $0x100] sm:$0xff] }
 0x11b   : > { %v3596_v10 = vpop.f32.mrf.mxu3  ;;  %v3598_v20 = vpop.f32.mrf.mxu0  ;;  %v639_v45 = vld [vmem:[%s3524_s17 + $0x108] sm:$0xff]  ;;  %v654_v13 = vld [vmem:[%s3524_s17 + $0x180] sm:$0xff] }
 0x11c   : > { %v3603_v32 = vpop.f32.mrf.mxu1  ;;  %1707 = vmatpush.bf16.msra.mxu0 %v672_v33  ;;  %v657_v33 = vld [vmem:[%s3524_s17 + $0x198] sm:$0xff] }
 0x11d   : > { %1756 = vmatpush.bf16.msra.mxu1 %v680_v61  ;;  %1805 = vmatpush.bf16.msra.mxu2 %v688_v62  ;;  %v695_v55 = vpack.c.bf16 %v657_v33, %v656_v17  ;;  %v607_v61 = vld [vmem:[%s3524_s17 + $0x8] sm:$0xff] }
 0x11e   : > { %1854 = vmatpush.bf16.msra.mxu3 %v696_v63  ;;  %v670_v30 = vpack.c.bf16 %v607_v61, %v606_v6  ;;  %v678_v63 = vpack.c.bf16 %v623_v38, %v622_v58  ;;  %v655_v17 = vld [vmem:[%s3524_s17 + $0x188] sm:$0xff]  ;;  %s4171_s17 = scalar_lea.vmem %s4208_s9, %s2526_s30 }
 0x11f   : > { %v694_v33 = vpack.c.bf16 %v655_v17, %v654_v13  ;;  %v1027_v17 = vadd.f32 %v3598_v20, %v3446_v59 }
 0x120   : > { %1708 = vmatpush.bf16.msra.mxu0 %v671_v44  ;;  %v686_v44 = vpack.c.bf16 %v639_v45, %v638_v12 }
 0x121   : > { %1757 = vmatpush.bf16.msra.mxu1 %v679_v11  ;;  %1806 = vmatpush.bf16.msra.mxu2 %v687_v18 }
 0x122   : > { %v3615_v25 = vpop.f32.mrf.mxu2  ;;  %1855 = vmatpush.bf16.msra.mxu3 %v695_v55 }
 0x123   : > { %v3620_v40 = vpop.f32.mrf.mxu3  ;;  %v1029_v62 = vpop.f32.mrf.mxu0 }
 0x124   : > { %v1078_v56 = vpop.f32.mrf.mxu1  ;;  %1709 = vmatpush.bf16.msra.mxu0 %v670_v30  ;;  %v1030_v45 = vadd.f32 %v1029_v62, %v3459_v3  ;;  %v1025_v62 = vadd.f32 %v3570_v26, %v3464_v36  ;;  %v2398_v26 = vld [vmem:[%s4203_s4 + $0x18] sm:$0xf0] }
 0x125   : > { %1758 = vmatpush.bf16.msra.mxu1 %v678_v63  ;;  %1807 = vmatpush.bf16.msra.mxu2 %v686_v44 }
 0x126   : > { %1224 = vmatmul.bf16.gmra.mxu0 %v3374_v43  ;;  %1856 = vmatpush.bf16.msra.mxu3 %v694_v33  ;;  %v2396_v33 = vld [vmem:[%s4203_s4 + $0x8] sm:$0xf] }
 0x127   : > { %1273 = vmatmul.bf16.gmra.mxu1 %v3376_v48  ;;  %1322 = vmatmul.bf16.gmra.mxu2 %v3381_v52 }
 0x128   : > { %1371 = vmatmul.bf16.gmra.mxu3 %v3386_v7 }
 0x12a   : > { %v1127_v11 = vpop.f32.mrf.mxu2 }
 0x12b   : > { %v1176_v18 = vpop.f32.mrf.mxu3  ;;  %v1031_v6 = vpop.f32.mrf.mxu0 }
 0x12c   : > { %v1080_v61 = vpop.f32.mrf.mxu1  ;;  %v1032_v63 = vadd.f32 %v1031_v6, %v3456_v2  ;;  %v2562_v6 = vld [vmem:[%s4203_s4 + $0x14] sm:$0xf0] }
 0x12d   : > { %v2397_v3 = vor.u32 %v2562_v6, %v2396_v33  ;;  %v2564_v33 = vld [vmem:[%s4203_s4 + $0x2c] sm:$0xf]  ;;  %v2414_v6 = vld [vmem:[%s4203_s4 + $0x38] sm:$0xf0] }
 0x132   : > { %v1129_v58 = vpop.f32.mrf.mxu2 }
 0x133   : > { %v1178_v38 = vpop.f32.mrf.mxu3  ;;  %v1034_v55 = vpop.f32.mrf.mxu0 }
 0x134   : > { %v1083_v30 = vpop.f32.mrf.mxu1  ;;  %v1035_v43 = vadd.f32 %v1034_v55, %v3422_v37  ;;  %v1079_v55 = vadd.f32 %v1078_v56, %v1030_v45  ;;  %v1022_v56 = vadd.f32 %v3544_v0, %v3466_v39  ;;  %v2401_v45 = vor.u32 %v2560_v16, %v2398_v26 }
 0x136   : > { %1229 = vmatmul.bf16.gmra.mxu0 %v3430_v41  ;;  %v1084_v44 = vadd.f32 %v1083_v30, %v1035_v43  ;;  %v2388_v41 = vld [vmem:[%s4203_s4] sm:$0xf]  ;;  %v1081_v30 = vadd.f32 %v1080_v61, %v1032_v63  ;;  %v1076_v61 = vadd.f32 %v3603_v32, %v1027_v17  ;;  %v1074_v63 = vadd.f32 %v3575_v19, %v1025_v62  ;;  %v2412_v62 = vld [vmem:[%s4203_s4 + $0x28] sm:$0xf] }
 0x137   : > { %1278 = vmatmul.bf16.gmra.mxu1 %v3432_v42  ;;  %1327 = vmatmul.bf16.gmra.mxu2 %v3434_v49  ;;  %v2561_v42 = vld [vmem:[%s4203_s4 + $0xc] sm:$0xf0]  ;;  %v2559_v49 = vld [vmem:[%s4203_s4 + $0x4] sm:$0xf]  ;;  %v1071_v0 = vadd.f32 %v3549_v47, %v1022_v56 }
 0x138   : > { %1376 = vmatmul.bf16.gmra.mxu3 %v3436_v50  ;;  %v2390_v50 = vld [vmem:[%s4203_s4 + $0x10] sm:$0xf0]  ;;  %v2389_v60 = vor.u32 %v2561_v42, %v2388_v41  ;;  %v1130_v59 = vadd.f32 %v1129_v58, %v1081_v30  ;;  %v1125_v58 = vadd.f32 %v3615_v25, %v1076_v61 }
 0x139   : > { %v2393_v14 = vor.u32 %v2559_v49, %v2390_v50 }
 0x13a   : > { %v1132_v48 = vpop.f32.mrf.mxu2  ;;  %v1179_v49 = vadd.f32 %v1178_v38, %v1130_v59  ;;  %v1174_v19 = vadd.f32 %v3620_v40, %v1125_v58  ;;  %v1394_v58 = vmax.f32 %v3518_v51, 0.0  ;;  %v2420_v51 = vld [vmem:[%s4203_s4 + $0x40] sm:$0xf] }
 0x13b   : > { %v1181_v52 = vpop.f32.mrf.mxu3  ;;  %v1036_v7 = vpop.f32.mrf.mxu0  ;;  %v1133_v43 = vadd.f32 %v1132_v48, %v1084_v44  ;;  %v1128_v44 = vadd.f32 %v1127_v11, %v1079_v55 }
 0x13c   : > { %v1085_v12 = vpop.f32.mrf.mxu1  ;;  %v1037_v13 = vadd.f32 %v1036_v7, %v3450_v1 }
 0x13e   : > { %v1086_v7 = vadd.f32 %v1085_v12, %v1037_v13  ;;  %v1182_v13 = vadd.f32 %v1181_v52, %v1133_v43  ;;  %v2406_v52 = vld [vmem:[%s4203_s4 + $0x30] sm:$0xf0] }
 0x140   : > { %v1410_v16 = vmax.f32 %v1182_v13, 0.0 }
 0x142   : > { %v1134_v20 = vpop.f32.mrf.mxu2 }
 0x143   : > { %v1135_v36 = vadd.f32 %v1134_v20, %v1086_v7  ;;  %v1183_v1 = vpop.f32.mrf.mxu3  ;;  %v1195_v2 = vpop.f32.mrf.mxu0 }
 0x144   : > { %v1196_v48 = vadd.f32 %v1195_v2, %v3495_v22  ;;  %v1244_v12 = vpop.f32.mrf.mxu1  ;;  %v1123_v2 = vadd.f32 %v3591_v4, %v1074_v63  ;;  %v1177_v22 = vadd.f32 %v1176_v18, %v1128_v44  ;;  %v1404_v18 = vmax.f32 %v1174_v19, 0.0 }
 0x145   : > { %v1184_v41 = vadd.f32 %v1183_v1, %v1135_v36  ;;  %v1120_v1 = vadd.f32 %v3563_v9, %v1071_v0  ;;  %v1408_v36 = vmax.f32 %v1179_v49, 0.0  ;;  %v2404_v9 = vld [vmem:[%s4203_s4 + $0x20] sm:$0xf]  ;;  %v1398_v63 = vmax.f32 %v3553_v35, 0.0 }
 0x146   : > { %v1245_v42 = vadd.f32 %v1244_v12, %v1196_v48  ;;  %1710 = vmatmul.bf16.vlgmr.msra.gmra.mxu0 %v2389_v60  ;;  %v1172_v47 = vadd.f32 %v3596_v10, %v1123_v2  ;;  %v1406_v11 = vmax.f32 %v1177_v22, 0.0  ;;  %v2563_v10 = vld [vmem:[%s4203_s4 + $0x24] sm:$0xf]  ;;  %v1390_v22 = vmax.f32 %v3500_v28, 0.0  ;;  %v2422_v28 = vld [vmem:[%s4203_s4 + $0x50] sm:$0xf0] }
 0x147   : > { %1759 = vmatmul.bf16.vlgmr.msra.gmra.mxu1 %v2393_v14  ;;  %v1412_v50 = vmax.f32 %v1184_v41, 0.0  ;;  %1808 = vmatmul.bf16.vlgmr.msra.gmra.mxu2 %v2397_v3  ;;  %v1169_v40 = vadd.f32 %v3568_v46, %v1120_v1  ;;  %v2566_v46 = vld [vmem:[%s4203_s4 + $0x34] sm:$0xf0]  ;;  %v2409_v43 = vor.u32 %v2563_v10, %v2406_v52  ;;  %v1396_v41 = vmax.f32 %v3527_v27, 0.0 }
 0x148   : > { %1857 = vmatmul.bf16.vlgmr.msra.gmra.mxu3 %v2401_v45  ;;  %v1402_v17 = vmax.f32 %v1172_v47, 0.0  ;;  %v2413_v61 = vor.u32 %v2566_v46, %v2412_v62  ;;  %v2417_v45 = vor.u32 %v2564_v33, %v2414_v6  ;;  %v1388_v27 = vmax.f32 %v3487_v53, 0.0  ;;  %v2428_v53 = vld [vmem:[%s4203_s4 + $0x48] sm:$0xf] }
 0x149   : > { %2034 = vmatpush.msrb.mxu3 %v1412_v50  ;;  %v1400_v7 = vmax.f32 %v1169_v40, 0.0  ;;  %v1386_v1 = vmax.f32 %v3479_v21, 0.0  ;;  %v1382_v10 = vmax.f32 %v3504_v29, 0.0  ;;  %v2436_v29 = vld [vmem:[%s4203_s4 + $0x60] sm:$0xf] }
 0x14a   : > { %v1293_v32 = vpop.f32.mrf.mxu2 }
 0x14b   : > { %v1294_v25 = vadd.f32 %v1293_v32, %v1245_v42  ;;  %v1342_v60 = vpop.f32.mrf.mxu3  ;;  %2035 = vmatpush.msrb.mxu3 %v1410_v16  ;;  %v1197_v59 = vpop.f32.mrf.mxu0  ;;  %v2570_v32 = vld [vmem:[%s4203_s4 + $0x54] sm:$0xf0] }
 0x14c   : > { %v1198_v14 = vadd.f32 %v1197_v59, %v3491_v15  ;;  %v1246_v3 = vpop.f32.mrf.mxu1  ;;  %v2565_v15 = vld [vmem:[%s4203_s4 + $0x2c] sm:$0xf0] }
 0x14d   : > { %v3679_v4 = vadd.f32 %v1342_v60, %v1294_v25  ;;  %2036 = vmatpush.msrb.mxu3 %v1408_v36  ;;  %v2405_v30 = vor.u32 %v2565_v15, %v2404_v9  ;;  %v2568_v36 = vld [vmem:[%s4203_s4 + $0x4c] sm:$0xf]  ;;  %v2430_v25 = vld [vmem:[%s4203_s4 + $0x58] sm:$0xf0] }
 0x14e   : > { %v1247_v38 = vadd.f32 %v1246_v3, %v1198_v14  ;;  %v2433_v40 = vor.u32 %v2568_v36, %v2430_v25  ;;  %v2462_v36 = vld [vmem:[%s4203_s4 + $0x98] sm:$0xf0] }
 0x14f   : > { %2037 = vmatpush.msrb.mxu3 %v1406_v11 }
 0x151   : > { %2038 = vmatpush.msrb.mxu3 %v1404_v18  ;;  %v1384_v18 = vmax.f32 %v3502_v34, 0.0 }
 0x152   : > { %v1295_v55 = vpop.f32.mrf.mxu2 }
 0x153   : > { %v1296_v26 = vadd.f32 %v1295_v55, %v1247_v38  ;;  %v1344_v20 = vpop.f32.mrf.mxu3  ;;  %2039 = vmatpush.msrb.mxu3 %v1402_v17  ;;  %v1200_v56 = vpop.f32.mrf.mxu0  ;;  %v2429_v38 = vor.u32 %v2570_v32, %v2428_v53  ;;  %v2460_v53 = vld [vmem:[%s4203_s4 + $0x88] sm:$0xf]  ;;  %v2578_v32 = vld [vmem:[%s4203_s4 + $0x94] sm:$0xf0] }
 0x154   : > { %v1201_v48 = vadd.f32 %v1200_v56, %v3468_v54  ;;  %v1249_v12 = vpop.f32.mrf.mxu1  ;;  %v1392_v54 = vmax.f32 %v3507_v31, 0.0  ;;  %v2569_v31 = vld [vmem:[%s4203_s4 + $0x4c] sm:$0xf0]  ;;  %v2446_v56 = vld [vmem:[%s4203_s4 + $0x78] sm:$0xf0] }
 0x155   : > { %v3708_v44 = vadd.f32 %v1344_v20, %v1296_v26  ;;  %2040 = vmatpush.msrb.mxu3 %v1400_v7  ;;  %v2421_v59 = vor.u32 %v2569_v31, %v2420_v51  ;;  %v2444_v7 = vld [vmem:[%s4203_s4 + $0x68] sm:$0xf]  ;;  %v2574_v26 = vld [vmem:[%s4203_s4 + $0x74] sm:$0xf0]  ;;  %v2572_v20 = vld [vmem:[%s4203_s4 + $0x6c] sm:$0xf] }
 0x156   : > { %v1250_v13 = vadd.f32 %v1249_v12, %v1201_v48  ;;  %1715 = vmatmul.bf16.gmra.mxu0 %v2405_v30  ;;  %v2573_v30 = vld [vmem:[%s4203_s4 + $0x6c] sm:$0xf0] }
 0x157   : > { %1764 = vmatmul.bf16.gmra.mxu1 %v2409_v43  ;;  %1813 = vmatmul.bf16.gmra.mxu2 %v2413_v61  ;;  %v2571_v43 = vld [vmem:[%s4203_s4 + $0x64] sm:$0xf]  ;;  %v2437_v48 = vor.u32 %v2573_v30, %v2436_v29  ;;  %v2478_v29 = vld [vmem:[%s4203_s4 + $0xb8] sm:$0xf0] }
 0x158   : > { %2041 = vmatpush.msrb.mxu3 %v1398_v63 }
 0x159   : > { %1862 = vmatmul.bf16.gmra.mxu3 %v2417_v45 }
 0x15a   : > { %2042 = vmatpush.msrb.mxu3 %v1396_v41  ;;  %v1298_v42 = vpop.f32.mrf.mxu2  ;;  %v2445_v41 = vor.u32 %v2574_v26, %v2444_v7 }
 0x15b   : > { %v1299_v49 = vadd.f32 %v1298_v42, %v1250_v13  ;;  %v1347_v50 = vpop.f32.mrf.mxu3  ;;  %v1202_v35 = vpop.f32.mrf.mxu0 }
 0x15c   : > { %2043 = vmatpush.msrb.mxu3 %v1394_v58  ;;  %v1203_v0 = vadd.f32 %v1202_v35, %v3483_v8  ;;  %v1251_v2 = vpop.f32.mrf.mxu1  ;;  %v2567_v8 = vld [vmem:[%s4203_s4 + $0x44] sm:$0xf] }
 0x15d   : > { %v3715_v16 = vadd.f32 %v1347_v50, %v1299_v49  ;;  %v2425_v14 = vor.u32 %v2567_v8, %v2422_v28  ;;  %v2577_v8 = vld [vmem:[%s4203_s4 + $0x8c] sm:$0xf0]  ;;  %v2575_v28 = vld [vmem:[%s4203_s4 + $0x84] sm:$0xf] }
 0x15e   : > { %2044 = vmatpush.msrb.mxu3 %v1392_v54  ;;  %v1252_v19 = vadd.f32 %v1251_v2, %v1203_v0  ;;  %v2449_v54 = vor.u32 %v2572_v20, %v2446_v56 }
 0x160   : > { %2045 = vmatpush.msrb.mxu3 %v1390_v22 }
 0x162   : > { %2046 = vmatpush.msrb.mxu3 %v1388_v27  ;;  %v1300_v60 = vpop.f32.mrf.mxu2 }
 0x163   : > { %v1301_v3 = vadd.f32 %v1300_v60, %v1252_v19  ;;  %v1349_v47 = vpop.f32.mrf.mxu3  ;;  %v1205_v11 = vpop.f32.mrf.mxu0 }
 0x164   : > { %2047 = vmatpush.msrb.mxu3 %v1386_v1  ;;  %v1206_v21 = vadd.f32 %v1205_v11, %v3481_v5  ;;  %v1254_v9 = vpop.f32.mrf.mxu1  ;;  %v2576_v1 = vld [vmem:[%s4203_s4 + $0x8c] sm:$0xf]  ;;  %v2461_v11 = vor.u32 %v2578_v32, %v2460_v53 }
 0x165   : > { %v3745_v15 = vadd.f32 %v1349_v47, %v1301_v3 }
 0x166   : > { %2048 = vmatpush.msrb.mxu3 %v1384_v18  ;;  %v1255_v52 = vadd.f32 %v1254_v9, %v1206_v21  ;;  %1720 = vmatmul.bf16.gmra.mxu0 %v2421_v59 }
 0x167   : > { %1769 = vmatmul.bf16.gmra.mxu1 %v2425_v14  ;;  %1818 = vmatmul.bf16.gmra.mxu2 %v2429_v38  ;;  %v2465_v38 = vor.u32 %v2576_v1, %v2462_v36  ;;  %v1953_v1 = vld [vmem:[%s4207_s8 + $0x30] sm:$0xff]  ;;  %v1954_v36 = vld [vmem:[%s4207_s8 + $0x38] sm:$0xff] }
 0x168   : > { %2049 = vmatpush.msrb.mxu3 %v1382_v10 }
 0x169   : > { %1867 = vmatmul.bf16.gmra.mxu3 %v2433_v40 }
 0x16a   : > { %v1303_v62 = vpop.f32.mrf.mxu2 }
 0x16b   : > { %v1304_v46 = vadd.f32 %v1303_v62, %v1255_v52  ;;  %v1352_v17 = vpop.f32.mrf.mxu3  ;;  %v1207_v34 = vpop.f32.mrf.mxu0  ;;  %v2468_v62 = vld [vmem:[%s4203_s4 + $0xa0] sm:$0xf] }
 0x16c   : > { %v1208_v33 = vadd.f32 %v1207_v34, %v3462_v23  ;;  %v1256_v5 = vpop.f32.mrf.mxu1  ;;  %v2438_v23 = vld [vmem:[%s4203_s4 + $0x70] sm:$0xf0] }
 0x16d   : > { %v3749_v6 = vadd.f32 %v1352_v17, %v1304_v46  ;;  %v2441_v12 = vor.u32 %v2571_v43, %v2438_v23  ;;  %v2581_v46 = vld [vmem:[%s4203_s4 + $0xac] sm:$0xf0]  ;;  %v2579_v17 = vld [vmem:[%s4203_s4 + $0xa4] sm:$0xf]  ;;  %v2470_v34 = vld [vmem:[%s4203_s4 + $0xb0] sm:$0xf0] }
 0x16e   : > { %v1257_v55 = vadd.f32 %v1256_v5, %v1208_v33  ;;  %v2476_v33 = vld [vmem:[%s4203_s4 + $0xa8] sm:$0xf]  ;;  %v2582_v5 = vld [vmem:[%s4203_s4 + $0xb4] sm:$0xf0]  ;;  %v2469_v43 = vor.u32 %v2581_v46, %v2468_v62  ;;  %v2473_v23 = vor.u32 %v2579_v17, %v2470_v34  ;;  %v1949_v46 = vld [vmem:[%s4207_s8 + $0x10] sm:$0xff] }
 0x16f   : > { %v2477_v20 = vor.u32 %v2582_v5, %v2476_v33  ;;  %v1952_v62 = vld [vmem:[%s4207_s8 + $0x28] sm:$0xff]  ;;  %v1950_v17 = vld [vmem:[%s4207_s8 + $0x18] sm:$0xff]  ;;  %v2094_v34 = vld [vmem:[%s4206_s7 + $0x10] sm:$0xff] }
 0x170   : > { %v1947_v33 = vld [vmem:[%s4207_s8] sm:$0xff]  ;;  %v1948_v5 = vld [vmem:[%s4207_s8 + $0x8] sm:$0xff]  ;;  %2108 = vperm.xlu1 %2698, %v2094_v34  }
 0x171   : > { %v4251_v34 = vld [vmem:[#allocation27_spill] sm:$0xff] }
 0x172   : > { %v1305_v61 = vpop.f32.mrf.mxu2 }
 0x173   : > { %v1306_v45 = vadd.f32 %v1305_v61, %v1257_v55  ;;  %v1354_v63 = vpop.f32.mrf.mxu3  ;;  %v1210_v13 = vpop.f32.mrf.mxu0  ;;  %v2580_v55 = vld [vmem:[%s4203_s4 + $0xac] sm:$0xf] }
 0x174   : > { %v1211_v58 = vadd.f32 %v1210_v13, %v3476_v24  ;;  %v1259_v42 = vpop.f32.mrf.mxu1  ;;  %v2452_v24 = vld [vmem:[%s4203_s4 + $0x80] sm:$0xf]  ;;  %v2481_v61 = vor.u32 %v2580_v55, %v2478_v29 }
 0x175   : > { %v3776_v49 = vadd.f32 %v1354_v63, %v1306_v45  ;;  %v2453_v60 = vor.u32 %v2577_v8, %v2452_v24  ;;  %v1962_v45 = vld [vmem:[%s4207_s8 + $0x78] sm:$0xff]  ;;  %v2584_v8 = vld [vmem:[%s4203_s4 + $0xcc] sm:$0xf] }
 0x176   : > { %v1260_v50 = vadd.f32 %v1259_v42, %v1211_v58  ;;  %1725 = vmatmul.bf16.gmra.mxu0 %v2437_v48  ;;  %2013 = vmatpush.msrb.mxu2 %v1962_v45  ;;  %v1959_v58 = vld [vmem:[%s4207_s8 + $0x60] sm:$0xff]  ;;  %v1960_v42 = vld [vmem:[%s4207_s8 + $0x68] sm:$0xff]  ;;  %v2586_v24 = vld [vmem:[%s4203_s4 + $0xd4] sm:$0xf0] }
 0x177   : > { %1774 = vmatmul.bf16.gmra.mxu1 %v2441_v12  ;;  %1823 = vmatmul.bf16.gmra.mxu2 %v2445_v41  ;;  %v1961_v12 = vld [vmem:[%s4207_s8 + $0x70] sm:$0xff] }
 0x178   : > { %1984 = vmatpush.msrb.mxu1 %v1961_v12  ;;  %2014 = vmatpush.msrb.mxu2 %v1960_v42  ;;  %v2587_v12 = vld [vmem:[%s4203_s4 + $0xe4] sm:$0xf]  ;;  %v2502_v45 = vld [vmem:[%s4203_s4 + $0xf0] sm:$0xf0]  ;;  %v2590_v42 = vld [vmem:[%s4203_s4 + $0xf4] sm:$0xf0] }
 0x179   : > { %1872 = vmatmul.bf16.gmra.mxu3 %v2449_v54  ;;  %v2484_v54 = vld [vmem:[%s4203_s4 + $0xc0] sm:$0xf] }
 0x17a   : > { %v1308_v35 = vpop.f32.mrf.mxu2  ;;  %1985 = vmatpush.msrb.mxu1 %v1959_v58  ;;  %v2508_v58 = vld [vmem:[%s4203_s4 + $0xe8] sm:$0xf] }
 0x17b   : > { %v1309_v0 = vadd.f32 %v1308_v35, %v1260_v50  ;;  %v1357_v2 = vpop.f32.mrf.mxu3  ;;  %v1212_v22 = vpop.f32.mrf.mxu0  ;;  %v2585_v50 = vld [vmem:[%s4203_s4 + $0xcc] sm:$0xf0]  ;;  %v2583_v35 = vld [vmem:[%s4203_s4 + $0xc4] sm:$0xf] }
 0x17c   : > { %v1213_v27 = vadd.f32 %v1212_v22, %v3473_v57  ;;  %v1261_v19 = vpop.f32.mrf.mxu1  ;;  %v2454_v57 = vld [vmem:[%s4203_s4 + $0x90] sm:$0xf0]  ;;  %v2485_v53 = vor.u32 %v2585_v50, %v2484_v54  ;;  %v2588_v54 = vld [vmem:[%s4203_s4 + $0xec] sm:$0xf]  ;;  %v2510_v50 = vld [vmem:[%s4203_s4 + $0xf8] sm:$0xf0] }
 0x17d   : > { %v3779_v51 = vadd.f32 %v1357_v2, %v1309_v0  ;;  %v2457_v59 = vor.u32 %v2575_v28, %v2454_v57  ;;  %v1957_v0 = vld [vmem:[%s4207_s8 + $0x50] sm:$0xff]  ;;  %v1958_v2 = vld [vmem:[%s4207_s8 + $0x58] sm:$0xff] }
 0x17e   : > { %v1262_v31 = vadd.f32 %v1261_v19, %v1213_v27  ;;  %v2486_v22 = vld [vmem:[%s4203_s4 + $0xd0] sm:$0xf0]  ;;  %1986 = vmatpush.msrb.mxu1 %v1957_v0  ;;  %2015 = vmatpush.msrb.mxu2 %v1958_v2  ;;  %v1955_v27 = vld [vmem:[%s4207_s8 + $0x40] sm:$0xff]  ;;  %v1956_v19 = vld [vmem:[%s4207_s8 + $0x48] sm:$0xff]  ;;  %v2505_v2 = vor.u32 %v2587_v12, %v2502_v45 }
 0x17f   : > { %v2494_v28 = vld [vmem:[%s4203_s4 + $0xd8] sm:$0xf0]  ;;  %v2489_v32 = vor.u32 %v2583_v35, %v2486_v22 }
 0x180   : > { %1987 = vmatpush.msrb.mxu1 %v1955_v27  ;;  %2016 = vmatpush.msrb.mxu2 %v1956_v19  ;;  %v2509_v19 = vor.u32 %v2590_v42, %v2508_v58 }
 0x182   : > { %v1310_v25 = vpop.f32.mrf.mxu2  ;;  %1988 = vmatpush.msrb.mxu1 %v1953_v1  ;;  %2017 = vmatpush.msrb.mxu2 %v1954_v36 }
 0x183   : > { %v1311_v14 = vadd.f32 %v1310_v25, %v1262_v31  ;;  %v1359_v3 = vpop.f32.mrf.mxu3  ;;  %v3805_v47 = vpop.f32.mrf.mxu0  ;;  %v2492_v31 = vld [vmem:[%s4203_s4 + $0xc8] sm:$0xf] }
 0x184   : > { %v3807_v18 = vpop.f32.mrf.mxu1  ;;  %v2093_v25 = vld [vmem:[%s4206_s7 + $0x8] sm:$0xff]  ;;  %2018 = vmatpush.msrb.mxu2 %v1952_v62 }
 0x185   : > { %v3809_v21 = vadd.f32 %v1359_v3, %v1311_v14  ;;  %v2493_v14 = vor.u32 %v2586_v24, %v2492_v31  ;;  %2103 = vperm.xlu0 %2697, %v2093_v25   ;;  %v2513_v24 = vor.u32 %v2588_v54, %v2510_v50  ;;  %v4248_v25 = vld [vmem:[#allocation26_spill] sm:$0xff] }
 0x186   : > { %1730 = vmatmul.bf16.gmra.mxu0 %v2453_v60  ;;  %2019 = vmatpush.msrb.mxu2 %v1950_v17 }
 0x187   : > { %1779 = vmatmul.bf16.gmra.mxu1 %v2457_v59  ;;  %1828 = vmatmul.bf16.gmra.mxu2 %v2461_v11  ;;  %v2497_v11 = vor.u32 %v2584_v8, %v2494_v28  ;;  %v2092_v8 = vld [vmem:[%s4206_s7] sm:$0xff] }
 0x188   : > { %2020 = vmatpush.msrb.mxu2 %v1948_v5  ;;  %2098 = vperm.xlu2 %2699, %v2092_v8   ;;  %v4252_v5 = vld [vmem:[#allocation21_spill] sm:$0xff] }
 0x189   : > { %1877 = vmatmul.bf16.gmra.mxu3 %v2465_v38  ;;  %v1951_v38 = vld [vmem:[%s4207_s8 + $0x20] sm:$0xff] }
 0x18a   : > { %v3811_v9 = vpop.f32.mrf.mxu2  ;;  %1989 = vmatpush.msrb.mxu1 %v1951_v38 }
 0x18b   : > { %v3813_v40 = vpop.f32.mrf.mxu3  ;;  %v3815_v10 = vpop.f32.mrf.mxu0 }
 0x18c   : > { %v3817_v52 = vpop.f32.mrf.mxu1  ;;  %1990 = vmatpush.msrb.mxu1 %v1949_v46  ;;  %v4250_v46 = vld [vmem:[#allocation23_spill] sm:$0xff] }
 0x18e   : > { %1991 = vmatpush.msrb.mxu1 %v1947_v33 }
 0x192   : > { %v3843_v30 = vpop.f32.mrf.mxu2 }
 0x193   : > { %v3845_v7 = vpop.f32.mrf.mxu3  ;;  %v3847_v26 = vpop.f32.mrf.mxu0 }
 0x194   : > { %v3849_v56 = vpop.f32.mrf.mxu1  ;;  %v1221_v33 = vadd.f32 %v3847_v26, %v4251_v34 }
 0x196   : > { %1735 = vmatmul.bf16.gmra.mxu0 %v2469_v43 }
 0x197   : > { %1784 = vmatmul.bf16.gmra.mxu1 %v2473_v23  ;;  %1833 = vmatmul.bf16.gmra.mxu2 %v2477_v20  ;;  %v2500_v20 = vld [vmem:[%s4203_s4 + $0xe0] sm:$0xf] }
 0x199   : > { %1882 = vmatmul.bf16.gmra.mxu3 %v2481_v61  ;;  %v2589_v61 = vld [vmem:[%s4203_s4 + $0xec] sm:$0xf0] }
 0x19a   : > { %v3851_v48 = vpop.f32.mrf.mxu2  ;;  %v2501_v0 = vor.u32 %v2589_v61, %v2500_v20 }
 0x19b   : > { %v3859_v63 = vpop.f32.mrf.mxu3  ;;  %v3861_v13 = vpop.f32.mrf.mxu0 }
 0x19c   : > { %v3863_v41 = vpop.f32.mrf.mxu1  ;;  %v1223_v20 = vadd.f32 %v3861_v13, %v4252_v5  ;;  %v1218_v13 = vadd.f32 %v3815_v10, %v3466_v39 }
 0x19e   : > { %v1267_v39 = vadd.f32 %v3817_v52, %v1218_v13  ;;  %v4062_v13 = vmax.f32 %v3749_v6, 0.0  ;;  %v4076_v6 = vmax.f32 %v3715_v16, 0.0  ;;  %v4264_v16 = vld [vmem:[#allocation13_spill] sm:$0xff] }
 0x1a0   : > { %4260 = vst [vmem:[#allocation23_spill] sm:$0xff] %v4062_v13 }
 0x1a1   : > { %4262 = vst [vmem:[#allocation21_spill] sm:$0xff] %v4076_v6 }
 0x1a2   : > { %v3907_v57 = vpop.f32.mrf.mxu2 }
 0x1a3   : > { %v3918_v60 = vpop.f32.mrf.mxu3  ;;  %v1225_v59 = vpop.f32.mrf.mxu0 }
 0x1a4   : > { %v1274_v3 = vpop.f32.mrf.mxu1 }
 0x1a6   : > { %1740 = vmatmul.bf16.gmra.mxu0 %v2485_v53 }
 0x1a7   : > { %1789 = vmatmul.bf16.gmra.mxu1 %v2489_v32  ;;  %1838 = vmatmul.bf16.gmra.mxu2 %v2493_v14  ;;  %v1226_v14 = vadd.f32 %v1225_v59, %v4248_v25 }
 0x1a9   : > { %1887 = vmatmul.bf16.gmra.mxu3 %v2497_v11  ;;  %v4249_v11 = vld [vmem:[#allocation25_spill] sm:$0xff]  ;;  %v1275_v61 = vadd.f32 %v1274_v3, %v1226_v14 }
 0x1aa   : > { %v1323_v55 = vpop.f32.mrf.mxu2 }
 0x1ab   : > { %v3941_v29 = vpop.f32.mrf.mxu3  ;;  %v1227_v43 = vpop.f32.mrf.mxu0 }
 0x1ac   : > { %v1276_v23 = vpop.f32.mrf.mxu1  ;;  %v1228_v38 = vadd.f32 %v1227_v43, %v4249_v11 }
 0x1ae   : > { %v1277_v12 = vadd.f32 %v1276_v23, %v1228_v38  ;;  %v1272_v23 = vadd.f32 %v3863_v41, %v1223_v20 }
 0x1b2   : > { %v1325_v35 = vpop.f32.mrf.mxu2 }
 0x1b3   : > { %v1374_v22 = vpop.f32.mrf.mxu3  ;;  %v1230_v27 = vpop.f32.mrf.mxu0  ;;  %v1326_v43 = vadd.f32 %v1325_v35, %v1277_v12 }
 0x1b4   : > { %v1279_v31 = vpop.f32.mrf.mxu1  ;;  %v1231_v28 = vadd.f32 %v1230_v27, %v3422_v37  ;;  %v2095_v37 = vld [vmem:[%s4206_s7 + $0x18] sm:$0x3f]  ;;  %v4254_v27 = vld [vmem:[#allocation22_spill] sm:$0xff] }
 0x1b5   : > { %2113 = vperm.xlu2 %2699, %v2095_v37  }
 0x1b6   : > { %1745 = vmatmul.bf16.gmra.mxu0 %v2501_v0  ;;  %v1280_v62 = vadd.f32 %v1279_v31, %v1231_v28  ;;  %v4253_v0 = vld [vmem:[#allocation24_spill] sm:$0xff]  ;;  %v1324_v31 = vadd.f32 %v1323_v55, %v1275_v61  ;;  %v1321_v28 = vadd.f32 %v3907_v57, %v1272_v23  ;;  %v1316_v57 = vadd.f32 %v3843_v30, %v1267_v39 }
 0x1b7   : > { %1794 = vmatmul.bf16.gmra.mxu1 %v2505_v2  ;;  %1843 = vmatmul.bf16.gmra.mxu2 %v2509_v19  ;;  %v1216_v26 = vadd.f32 %v3805_v47, %v4253_v0  ;;  %v1270_v2 = vadd.f32 %v3849_v56, %v1221_v33 }
 0x1b8   : > { %v1373_v56 = vadd.f32 %v3941_v29, %v1324_v31  ;;  %v1370_v55 = vadd.f32 %v3918_v60, %v1321_v28  ;;  %v4255_v29 = vld [vmem:[#allocation16_spill] sm:$0xff] }
 0x1b9   : > { %1892 = vmatmul.bf16.gmra.mxu3 %v2513_v24  ;;  %v1265_v47 = vadd.f32 %v3807_v18, %v1216_v26  ;;  %v1319_v10 = vadd.f32 %v3851_v48, %v1270_v2 }
 0x1ba   : > { %v1328_v53 = vpop.f32.mrf.mxu2  ;;  %v4010_v11 = vmax.f32 %v1373_v56, 0.0 }
 0x1bb   : > { %v1377_v32 = vpop.f32.mrf.mxu3  ;;  %v1232_v1 = vpop.f32.mrf.mxu0  ;;  %v1329_v45 = vadd.f32 %v1328_v53, %v1280_v62  ;;  %v1375_v53 = vadd.f32 %v1374_v22, %v1326_v43  ;;  %v1314_v14 = vadd.f32 %v3811_v9, %v1265_v47  ;;  %v1368_v30 = vadd.f32 %v3859_v63, %v1319_v10  ;;  %v4266_v10 = vld [vmem:[#allocation18_spill] sm:$0xff] }
 0x1bc   : > { %v1281_v36 = vpop.f32.mrf.mxu1  ;;  %v1233_v17 = vadd.f32 %v1232_v1, %v4250_v46  ;;  %v1365_v62 = vadd.f32 %v3845_v7, %v1316_v57  ;;  %v4018_v46 = vmax.f32 %v1370_v55, 0.0 }
 0x1bd   : > { %v1378_v24 = vadd.f32 %v1377_v32, %v1329_v45  ;;  %v4002_v18 = vmax.f32 %v1375_v53, 0.0  ;;  %v1363_v9 = vadd.f32 %v3813_v40, %v1314_v14  ;;  %v4024_v63 = vmax.f32 %v1368_v30, 0.0  ;;  %v4256_v40 = vld [vmem:[#allocation20_spill] sm:$0xff] }
 0x1be   : > { %v1282_v58 = vadd.f32 %v1281_v36, %v1233_v17  ;;  %v4029_v7 = vmax.f32 %v1365_v62, 0.0 }
 0x1bf   : > { %v3995_v36 = vmax.f32 %v1378_v24, 0.0  ;;  %v4035_v61 = vmax.f32 %v1363_v9, 0.0 }
 0x1c2   : > { %v1330_v59 = vpop.f32.mrf.mxu2 }
 0x1c3   : > { %v1331_v42 = vadd.f32 %v1330_v59, %v1282_v58  ;;  %v1379_v54 = vpop.f32.mrf.mxu3  ;;  %v1711_v50 = vpop.f32.mrf.mxu0  ;;  %v4043_v58 = vmax.f32 %v3809_v21, 0.0  ;;  %v4049_v59 = vmax.f32 %v3779_v51, 0.0  ;;  %v4259_v51 = vld [vmem:[#allocation19_spill] sm:$0xff] }
 0x1c4   : > { %v1712_v19 = vadd.f32 %v1711_v50, %v4254_v27  ;;  %v1760_v3 = vpop.f32.mrf.mxu1  ;;  %v4070_v27 = vmax.f32 %v3745_v15, 0.0 }
 0x1c5   : > { %v1380_v8 = vadd.f32 %v1379_v54, %v1331_v42  ;;  %4257 = vst [vmem:[#allocation26_spill] sm:$0xff] %v4049_v59  ;;  %v4055_v42 = vmax.f32 %v3776_v49, 0.0 }
 0x1c6   : > { %v1761_v35 = vadd.f32 %v1760_v3, %v1712_v19  ;;  %4261 = vst [vmem:[#allocation27_spill] sm:$0xff] %v4070_v27  ;;  %v4082_v3 = vmax.f32 %v3708_v44, 0.0 }
 0x1c7   : > { %v3989_v1 = vmax.f32 %v1380_v8, 0.0  ;;  %4258 = vst [vmem:[#allocation25_spill] sm:$0xff] %v4055_v42 }
 0x1c8   : > { %4263 = vst [vmem:[#allocation24_spill] sm:$0xff] %v4082_v3 }
 0x1c9   : > { %2591 = vmatpush.msra.mxu1 %v3989_v1  ;;  %2592 = vmatpush.msra.mxu2 %v3989_v1 }
 0x1ca   : > { %2593 = vmatpush.msra.mxu3 %v3989_v1  ;;  %v1809_v41 = vpop.f32.mrf.mxu2 }
 0x1cb   : > { %v1810_v52 = vadd.f32 %v1809_v41, %v1761_v35  ;;  %v1858_v22 = vpop.f32.mrf.mxu3  ;;  %2594 = vmatpush.msra.mxu1 %v3995_v36  ;;  %2595 = vmatpush.msra.mxu2 %v3995_v36  ;;  %v1713_v48 = vpop.f32.mrf.mxu0  ;;  %v4089_v35 = vmax.f32 %v3679_v4, 0.0 }
 0x1cc   : > { %2596 = vmatpush.msra.mxu3 %v3995_v36  ;;  %v1714_v32 = vadd.f32 %v1713_v48, %v4255_v29  ;;  %v1762_v25 = vpop.f32.mrf.mxu1 }
 0x1cd   : > { %v4012_v60 = vadd.f32 %v1858_v22, %v1810_v52  ;;  %2597 = vmatpush.msra.mxu1 %v4002_v18  ;;  %2598 = vmatpush.msra.mxu2 %v4002_v18  ;;  %4265 = vst [vmem:[#allocation22_spill] sm:$0xff] %v4089_v35 }
 0x1ce   : > { %v1763_v38 = vadd.f32 %v1762_v25, %v1714_v32  ;;  %2599 = vmatpush.msra.mxu3 %v4002_v18  ;;  %v4267_v32 = vld [vmem:[#allocation17_spill] sm:$0xff] }
 0x1cf   : > { %2600 = vmatpush.msra.mxu1 %v4010_v11  ;;  %2601 = vmatpush.msra.mxu2 %v4010_v11 }
 0x1d0   : > { %2602 = vmatpush.msra.mxu3 %v4010_v11 }
 0x1d1   : > { %2603 = vmatpush.msra.mxu1 %v4018_v46  ;;  %2604 = vmatpush.msra.mxu2 %v4018_v46 }
 0x1d2   : > { %2605 = vmatpush.msra.mxu3 %v4018_v46  ;;  %v1811_v17 = vpop.f32.mrf.mxu2 }
 0x1d3   : > { %v1812_v34 = vadd.f32 %v1811_v17, %v1763_v38  ;;  %v1860_v33 = vpop.f32.mrf.mxu3  ;;  %2606 = vmatpush.msra.mxu1 %v4024_v63  ;;  %2607 = vmatpush.msra.mxu2 %v4024_v63  ;;  %v1716_v5 = vpop.f32.mrf.mxu0 }
 0x1d4   : > { %2608 = vmatpush.msra.mxu3 %v4024_v63  ;;  %v1717_v20 = vadd.f32 %v1716_v5, %v4256_v40  ;;  %v1765_v37 = vpop.f32.mrf.mxu1 }
 0x1d5   : > { %v4037_v12 = vadd.f32 %v1860_v33, %v1812_v34  ;;  %2609 = vmatpush.msra.mxu1 %v4029_v7  ;;  %2610 = vmatpush.msra.mxu2 %v4029_v7  ;;  %v4268_v33 = vld [vmem:[#allocation10_spill] sm:$0xff] }
 0x1d6   : > { %v1766_v45 = vadd.f32 %v1765_v37, %v1717_v20  ;;  %2611 = vmatpush.msra.mxu3 %v4029_v7 }
 0x1d7   : > { %2612 = vmatpush.msra.mxu1 %v4035_v61  ;;  %2613 = vmatpush.msra.mxu2 %v4035_v61 }
 0x1d8   : > { %2614 = vmatpush.msra.mxu3 %v4035_v61 }
 0x1d9   : > { %2615 = vmatpush.msra.mxu1 %v4043_v58  ;;  %2616 = vmatpush.msra.mxu2 %v4043_v58 }
 0x1da   : > { %2617 = vmatpush.msra.mxu3 %v4043_v58  ;;  %v1814_v43 = vpop.f32.mrf.mxu2 }
 0x1db   : > { %v1815_v21 = vadd.f32 %v1814_v43, %v1766_v45  ;;  %2618 = vmatpush.msra.mxu1 %v4049_v59  ;;  %2619 = vmatpush.msra.mxu2 %v4049_v59  ;;  %v1718_v50 = vpop.f32.mrf.mxu0 }
 0x1dc   : > { %v1863_v54 = vpop.f32.mrf.mxu3  ;;  %2620 = vmatpush.msra.mxu3 %v4049_v59  ;;  %v1719_v0 = vadd.f32 %v1718_v50, %v4259_v51  ;;  %v1767_v26 = vpop.f32.mrf.mxu1  ;;  %v4269_v50 = vld [vmem:[#allocation15_spill] sm:$0xff] }
 0x1dd   : > { %v4064_v2 = vadd.f32 %v1863_v54, %v1815_v21  ;;  %2621 = vmatpush.msra.mxu1 %v4055_v42  ;;  %2622 = vmatpush.msra.mxu2 %v4055_v42 }
 0x1de   : > { %v1768_v49 = vadd.f32 %v1767_v26, %v1719_v0  ;;  %2623 = vmatpush.msra.mxu3 %v4055_v42  ;;  %v4276_v42 = vld [vmem:[#allocation14_spill] sm:$0xff] }
 0x1df   : > { %2624 = vmatpush.msra.mxu1 %v4062_v13  ;;  %2625 = vmatpush.msra.mxu2 %v4062_v13 }
 0x1e0   : > { %2626 = vmatpush.msra.mxu3 %v4062_v13 }
 0x1e1   : > { %2627 = vmatpush.msra.mxu1 %v4070_v27  ;;  %2628 = vmatpush.msra.mxu2 %v4070_v27 }
 0x1e2   : > { %2629 = vmatpush.msra.mxu3 %v4070_v27  ;;  %v1816_v19 = vpop.f32.mrf.mxu2 }
 0x1e3   : > { %v1817_v15 = vadd.f32 %v1816_v19, %v1768_v49  ;;  %2630 = vmatpush.msra.mxu1 %v4076_v6  ;;  %2631 = vmatpush.msra.mxu2 %v4076_v6  ;;  %v1721_v31 = vpop.f32.mrf.mxu0 }
 0x1e4   : > { %v1865_v23 = vpop.f32.mrf.mxu3  ;;  %2632 = vmatpush.msra.mxu3 %v4076_v6  ;;  %v1722_v24 = vadd.f32 %v1721_v31, %v4264_v16  ;;  %v1770_v8 = vpop.f32.mrf.mxu1 }
 0x1e5   : > { %v4091_v28 = vadd.f32 %v1865_v23, %v1817_v15  ;;  %2633 = vmatpush.msra.mxu1 %v4082_v3  ;;  %2634 = vmatpush.msra.mxu2 %v4082_v3 }
 0x1e6   : > { %v1771_v44 = vadd.f32 %v1770_v8, %v1722_v24  ;;  %2635 = vmatpush.msra.mxu3 %v4082_v3 }
 0x1e7   : > { %2636 = vmatpush.msra.mxu1 %v4089_v35  ;;  %2637 = vmatpush.msra.mxu2 %v4089_v35 }
 0x1e8   : > { %2638 = vmatpush.msra.mxu3 %v4089_v35 }
 0x1ea   : > { %v1819_v53 = vpop.f32.mrf.mxu2 }
 0x1eb   : > { %v1820_v47 = vadd.f32 %v1819_v53, %v1771_v44  ;;  %v1723_v4 = vpop.f32.mrf.mxu0 }
 0x1ec   : > { %v1868_v39 = vpop.f32.mrf.mxu3  ;;  %v1724_v56 = vadd.f32 %v1723_v4, %v4266_v10  ;;  %v1772_v41 = vpop.f32.mrf.mxu1 }
 0x1ed   : > { %v4100_v57 = vadd.f32 %v1868_v39, %v1820_v47 }
 0x1ee   : > { %v1773_v55 = vadd.f32 %v1772_v41, %v1724_v56 }
 0x1f2   : > { %v1821_v52 = vpop.f32.mrf.mxu2 }
 0x1f3   : > { %v1822_v22 = vadd.f32 %v1821_v52, %v1773_v55  ;;  %v1726_v29 = vpop.f32.mrf.mxu0 }
 0x1f4   : > { %v1870_v48 = vpop.f32.mrf.mxu3  ;;  %v1727_v25 = vadd.f32 %v1726_v29, %v4267_v32  ;;  %v1775_v14 = vpop.f32.mrf.mxu1 }
 0x1f5   : > { %v4103_v30 = vadd.f32 %v1870_v48, %v1822_v22 }
 0x1f6   : > { %v1776_v38 = vadd.f32 %v1775_v14, %v1727_v25 }
 0x1fa   : > { %v1824_v62 = vpop.f32.mrf.mxu2 }
 0x1fb   : > { %v1825_v9 = vadd.f32 %v1824_v62, %v1776_v38  ;;  %v1728_v34 = vpop.f32.mrf.mxu0 }
 0x1fc   : > { %v1873_v17 = vpop.f32.mrf.mxu3  ;;  %v1729_v5 = vadd.f32 %v1728_v34, %v4268_v33  ;;  %v1777_v40 = vpop.f32.mrf.mxu1  ;;  %v4270_v34 = vld [vmem:[#allocation11_spill] sm:$0xff] }
 0x1fd   : > { %v4106_v20 = vadd.f32 %v1873_v17, %v1825_v9 }
 0x1fe   : > { %v1778_v37 = vadd.f32 %v1777_v40, %v1729_v5 }
 0x202   : > { %v1826_v45 = vpop.f32.mrf.mxu2 }
 0x203   : > { %v1827_v43 = vadd.f32 %v1826_v45, %v1778_v37  ;;  %v1731_v54 = vpop.f32.mrf.mxu0  ;;  %v4271_v37 = vld [vmem:[#allocation12_spill] sm:$0xff] }
 0x204   : > { %v1875_v21 = vpop.f32.mrf.mxu3  ;;  %v1732_v51 = vadd.f32 %v1731_v54, %v4269_v50  ;;  %v1780_v0 = vpop.f32.mrf.mxu1  ;;  %v4273_v54 = vld [vmem:[#allocation8_spill] sm:$0xff] }
 0x205   : > { %v4109_v26 = vadd.f32 %v1875_v21, %v1827_v43  ;;  %v4272_v43 = vld [vmem:[#allocation9_spill] sm:$0xff] }
 0x206   : > { %v1781_v49 = vadd.f32 %v1780_v0, %v1732_v51  ;;  %v4274_v0 = vld [vmem:[#allocation7_spill] sm:$0xff] }
 0x20a   : > { %v1829_v19 = vpop.f32.mrf.mxu2 }
 0x20b   : > { %v1830_v15 = vadd.f32 %v1829_v19, %v1781_v49  ;;  %v1733_v31 = vpop.f32.mrf.mxu0  ;;  %v4275_v19 = vld [vmem:[#allocation6_spill] sm:$0xff] }
 0x20c   : > { %v1878_v23 = vpop.f32.mrf.mxu3  ;;  %v1782_v16 = vpop.f32.mrf.mxu1  ;;  %v1734_v59 = vadd.f32 %v1733_v31, %v4276_v42 }
 0x20d   : > { %v4111_v24 = vadd.f32 %v1878_v23, %v1830_v15 }
 0x212   : > { %v1831_v8 = vpop.f32.mrf.mxu2 }
 0x213   : > { %v1736_v53 = vpop.f32.mrf.mxu0 }
 0x214   : > { %v1880_v44 = vpop.f32.mrf.mxu3  ;;  %v1785_v47 = vpop.f32.mrf.mxu1  ;;  %v1737_v49 = vadd.f32 %v1736_v53, %v4274_v0 }
 0x21a   : > { %v1834_v39 = vpop.f32.mrf.mxu2 }
 0x21b   : > { %v1738_v10 = vpop.f32.mrf.mxu0 }
 0x21c   : > { %v1883_v4 = vpop.f32.mrf.mxu3  ;;  %v1787_v56 = vpop.f32.mrf.mxu1  ;;  %v1739_v15 = vadd.f32 %v1738_v10, %v4275_v19  ;;  %v4123_v10 = vld [vmem:[%s4205_s6] sm:$0xff] }
 0x21d   : > { %2050 = vmatmul.f32.vlgmr.msrb.gmra.mxu3 %v4123_v10  ;;  %v2104_v19 = vpop.permute.xlu0 %2103 }
 0x222   : > { %v1836_v41 = vpop.f32.mrf.mxu2 }
 0x223   : > { %v1741_v52 = vpop.f32.mrf.mxu0 }
 0x224   : > { %v1885_v55 = vpop.f32.mrf.mxu3  ;;  %v1790_v22 = vpop.f32.mrf.mxu1  ;;  %v1742_v45 = vadd.f32 %v1741_v52, %v4271_v37  ;;  %v1786_v52 = vadd.f32 %v1785_v47, %v1737_v49 }
 0x226   : > { %v1791_v35 = vadd.f32 %v1790_v22, %v1742_v45 }
 0x22a   : > { %v1839_v48 = vpop.f32.mrf.mxu2 }
 0x22b   : > { %v1743_v32 = vpop.f32.mrf.mxu0 }
 0x22c   : > { %v1888_v29 = vpop.f32.mrf.mxu3  ;;  %v1792_v25 = vpop.f32.mrf.mxu1  ;;  %v1744_v21 = vadd.f32 %v1743_v32, %v4272_v43  ;;  %v1788_v32 = vadd.f32 %v1787_v56, %v1739_v15  ;;  %v1840_v43 = vadd.f32 %v1839_v48, %v1791_v35  ;;  %v4129_v48 = vld [vmem:[%s4205_s6 + $0x8] sm:$0xff] }
 0x22d   : > { %2053 = vmatmul.f32.gmra.mxu3 %v4129_v48 }
 0x22e   : > { %v1793_v3 = vadd.f32 %v1792_v25, %v1744_v21  ;;  %v1900_v25 = vmax.f32 %v4064_v2, 0.0 }
 0x232   : > { %v1841_v14 = vpop.f32.mrf.mxu2 }
 0x233   : > { %v1746_v62 = vpop.f32.mrf.mxu0 }
 0x234   : > { %v1890_v38 = vpop.f32.mrf.mxu3  ;;  %v1795_v9 = vpop.f32.mrf.mxu1  ;;  %v1747_v33 = vadd.f32 %v1746_v62, %v4270_v34  ;;  %v1842_v62 = vadd.f32 %v1841_v14, %v1793_v3  ;;  %v1783_v3 = vadd.f32 %v1782_v16, %v1734_v59 }
 0x236   : > { %v1796_v51 = vadd.f32 %v1795_v9, %v1747_v33  ;;  %v1837_v33 = vadd.f32 %v1836_v41, %v1788_v32  ;;  %v1891_v53 = vadd.f32 %v1890_v38, %v1842_v62  ;;  %v1832_v31 = vadd.f32 %v1831_v8, %v1783_v3  ;;  %v2099_v38 = vpop.permute.xlu2 %2098 }
 0x237   : > { %v1906_v8 = vmax.f32 %v4111_v24, 0.0  ;;  %v1901_v24 = vmax.f32 %v4091_v28, 0.0 }
 0x238   : > { %v1886_v47 = vadd.f32 %v1885_v55, %v1837_v33  ;;  %v1911_v35 = vmax.f32 %v1891_v53, 0.0  ;;  %v1881_v41 = vadd.f32 %v1880_v44, %v1832_v31  ;;  %v1916_v44 = vld [vmem:[%s4205_s6 + $0x10] sm:$0xff]  ;;  %v1903_v55 = vmax.f32 %v4103_v30, 0.0 }
 0x239   : > { %2056 = vmatmul.f32.gmra.mxu3 %v1916_v44  ;;  %v1898_v30 = vmax.f32 %v4012_v60, 0.0  ;;  %v4281_v60 = vld [vmem:[#allocation21_spill] sm:$0xff] }
 0x23a   : > { %v1844_v17 = vpop.f32.mrf.mxu2  ;;  %v1909_v22 = vmax.f32 %v1886_v47, 0.0  ;;  %v1907_v16 = vmax.f32 %v1881_v41, 0.0 }
 0x23b   : > { %v1748_v40 = vpop.f32.mrf.mxu0  ;;  %v1845_v6 = vadd.f32 %v1844_v17, %v1796_v51 }
 0x23c   : > { %v1893_v5 = vpop.f32.mrf.mxu3  ;;  %v1749_v50 = vadd.f32 %v1748_v40, %v4273_v54  ;;  %v1797_v23 = vpop.f32.mrf.mxu1 }
 0x23d   : > { %v1894_v40 = vadd.f32 %v1893_v5, %v1845_v6 }
 0x23e   : > { %v1798_v27 = vadd.f32 %v1797_v23, %v1749_v50  ;;  %v2114_v33 = vpop.permute.xlu2 %2113 }
 0x23f   : > { %v1912_v42 = vmax.f32 %v1894_v40, 0.0 }
 0x242   : > { %v1846_v13 = vpop.f32.mrf.mxu2 }
 0x243   : > { %v1847_v34 = vadd.f32 %v1846_v13, %v1798_v27  ;;  %v1835_v13 = vadd.f32 %v1834_v39, %v1786_v52  ;;  %v1889_v27 = vadd.f32 %v1888_v29, %v1840_v43  ;;  %v1905_v39 = vmax.f32 %v4109_v26, 0.0  ;;  %v1917_v26 = vld [vmem:[%s4205_s6 + $0x18] sm:$0x3f]  ;;  %v2109_v52 = vpop.permute.xlu1 %2108 }
 0x244   : > { %v1895_v37 = vpop.f32.mrf.mxu3  ;;  %v1902_v29 = vmax.f32 %v4100_v57, 0.0  ;;  %2059 = vmatmul.f32.gmra.mxu3 %v1917_v26 }
 0x245   : > { %v1896_v9 = vadd.f32 %v1895_v37, %v1847_v34  ;;  %v1884_v6 = vadd.f32 %v1883_v4, %v1835_v13  ;;  %v1910_v56 = vmax.f32 %v1889_v27, 0.0  ;;  %v1904_v4 = vmax.f32 %v4106_v20, 0.0 }
 0x246   : > { %v1899_v20 = vmax.f32 %v4037_v12, 0.0 }
 0x247   : > { %v1913_v54 = vmax.f32 %v1896_v9, 0.0  ;;  %v1908_v59 = vmax.f32 %v1884_v6, 0.0 }
 0x249   : > { %1918 = vmatpush.msrb.mxu0 %v1913_v54 }
 0x24b   : > { %1919 = vmatpush.msrb.mxu0 %v1912_v42 }
 0x24c   : > { %2088 = vmatmul.f32.vlgmr.msra.gmra.mxu3 %v1917_v26 }
 0x24d   : > { %1920 = vmatpush.msrb.mxu0 %v1911_v35 }
 0x24f   : > { %1921 = vmatpush.msrb.mxu0 %v1910_v56 }
 0x251   : > { %1922 = vmatpush.msrb.mxu0 %v1909_v22 }
 0x253   : > { %1923 = vmatpush.msrb.mxu0 %v1908_v59 }
 0x255   : > { %1924 = vmatpush.msrb.mxu0 %v1907_v16 }
 0x257   : > { %1925 = vmatpush.msrb.mxu0 %v1906_v8 }
 0x259   : > { %1926 = vmatpush.msrb.mxu0 %v1905_v39 }
 0x25b   : > { %1927 = vmatpush.msrb.mxu0 %v1904_v4 }
 0x25d   : > { %1928 = vmatpush.msrb.mxu0 %v1903_v55 }
 0x25f   : > { %1929 = vmatpush.msrb.mxu0 %v1902_v29 }
 0x261   : > { %1930 = vmatpush.msrb.mxu0 %v1901_v24 }
 0x263   : > { %1931 = vmatpush.msrb.mxu0 %v1900_v25 }
 0x265   : > { %1932 = vmatpush.msrb.mxu0 %v1899_v20 }
 0x267   : > { %1933 = vmatpush.msrb.mxu0 %v1898_v30 }
 0x268   : > { %1934 = vmatmul.f32.vlgmr.msrb.gmra.mxu0 %v4123_v10 }
 0x269   : > { %2063 = vmatpush.msra.mxu0 %v3989_v1  ;;  %v4277_v1 = vld [vmem:[#allocation26_spill] sm:$0xff] }
 0x26b   : > { %2064 = vmatpush.msra.mxu0 %v3995_v36  ;;  %v4278_v36 = vld [vmem:[#allocation25_spill] sm:$0xff] }
 0x26d   : > { %2065 = vmatpush.msra.mxu0 %v4002_v18  ;;  %v4279_v18 = vld [vmem:[#allocation23_spill] sm:$0xff] }
 0x26f   : > { %2066 = vmatpush.msra.mxu0 %v4010_v11  ;;  %v4280_v11 = vld [vmem:[#allocation27_spill] sm:$0xff] }
 0x270   : > { %1937 = vmatmul.f32.gmra.mxu0 %v4129_v48 }
 0x271   : > { %2067 = vmatpush.msra.mxu0 %v4018_v46  ;;  %v4282_v46 = vld [vmem:[#allocation24_spill] sm:$0xff] }
 0x273   : > { %2068 = vmatpush.msra.mxu0 %v4024_v63  ;;  %v4283_v63 = vld [vmem:[#allocation22_spill] sm:$0xff] }
 0x275   : > { %2069 = vmatpush.msra.mxu0 %v4029_v7 }
 0x277   : > { %2070 = vmatpush.msra.mxu0 %v4035_v61 }
 0x278   : > { %1940 = vmatmul.f32.gmra.mxu0 %v1916_v44 }
 0x279   : > { %2071 = vmatpush.msra.mxu0 %v4043_v58 }
 0x27b   : > { %2072 = vmatpush.msra.mxu0 %v4277_v1 }
 0x27d   : > { %2073 = vmatpush.msra.mxu0 %v4278_v36 }
 0x27f   : > { %2074 = vmatpush.msra.mxu0 %v4279_v18 }
 0x280   : > { %1943 = vmatmul.f32.gmra.mxu0 %v1917_v26 }
 0x281   : > { %2075 = vmatpush.msra.mxu0 %v4280_v11 }
 0x283   : > { %2076 = vmatpush.msra.mxu0 %v4281_v60 }
 0x285   : > { %2077 = vmatpush.msra.mxu0 %v4282_v46 }
 0x287   : > { %2078 = vmatpush.msra.mxu0 %v4283_v63 }
 0x288   : > { %2079 = vmatmul.f32.vlgmr.msra.gmra.mxu0 %v4123_v10 }
 0x2a0   : > { %v2051_v2 = vpop.f32.mrf.mxu3 }
 0x2b0   : > { %v2054_v28 = vpop.f32.mrf.mxu3 }
 0x2bc   : > { %v2057_v51 = vpop.f32.mrf.mxu3 }
 0x2c7   : > { %v2060_v37 = vpop.f32.mrf.mxu3 }
 0x2cf   : > { %v2089_v54 = vpop.f32.mrf.mxu3 }
 0x2e5   : > { %v1935_v7 = vpop.f32.mrf.mxu0 }
 0x2e6   : > { %2514 = vmatmul.msk.f32.vlgmr.msrb.gmra.mxu1 %vm1963_vm0, %v1935_v7  ;;  %2518 = vmatmul.msk.f32.vlgmr.msrb.gmra.mxu2 %vm1963_vm0, %v1935_v7 }
 0x2ed   : > { %v1938_v61 = vpop.f32.mrf.mxu0 }
 0x2ee   : > { %2515 = vmatmul.msk.f32.gmra.mxu1 %vm1963_vm0, %v1938_v61  ;;  %2519 = vmatmul.msk.f32.gmra.mxu2 %vm1963_vm0, %v1938_v61 }
 0x2f5   : > { %v1941_v12 = vpop.f32.mrf.mxu0 }
 0x2f6   : > { %2516 = vmatmul.msk.f32.gmra.mxu1 %vm1963_vm0, %v1941_v12  ;;  %2520 = vmatmul.msk.f32.gmra.mxu2 %vm1963_vm0, %v1941_v12 }
 0x2fd   : > { %v1944_v58 = vpop.f32.mrf.mxu0 }
 0x2fe   : > { %2517 = vmatmul.msk.f32.gmra.mxu1 %vm1963_vm0, %v1944_v58  ;;  %2521 = vmatmul.msk.f32.gmra.mxu2 %vm1963_vm0, %v1944_v58 }
 0x305   : > { %v2080_v5 = vpop.f32.mrf.mxu0 }
 0x306   : > { %2082 = vmatmul.f32.vlgmr.msra.gmra.mxu1 %v4129_v48  ;;  %2085 = vmatmul.f32.vlgmr.msra.gmra.mxu2 %v1916_v44 }
 0x363   : > { %v1993_v57 = vpop.f32.mrf.mxu1 }
 0x364   : > { %v2052_v14 = vadd.f32 %v2051_v2, %v1993_v57 }
 0x366   : > { %v2116_v17 = vadd.f32 %v2099_v38, %v2052_v14 }
 0x368   : > { %2124 = vst [vmem:[%s4171_s17] sm:$0xff] %v2116_v17 }
 0x369   : > { %v2022_v45 = vpop.f32.mrf.mxu2 }
 0x36a   : > { %v2081_v21 = vadd.f32 %v2080_v5, %v2022_v45 }
 0x36b   : > { %v1996_v50 = vpop.f32.mrf.mxu1 }
 0x36c   : > { %v2117_v0 = vadd.f32 %v2099_v38, %v2081_v21  ;;  %v2055_v49 = vadd.f32 %v2054_v28, %v1996_v50 }
 0x36e   : > { %2125 = vst [vmem:[%s4171_s17 + $0x8] sm:$0xff] %v2117_v0  ;;  %v2118_v15 = vadd.f32 %v2104_v19, %v2055_v49 }
 0x370   : > { %2126 = vst [vmem:[%s4171_s17 + $0x10] sm:$0xff] %v2118_v15 }
 0x371   : > { %v2025_v23 = vpop.f32.mrf.mxu2 }
 0x373   : > { %v1999_v62 = vpop.f32.mrf.mxu1 }
 0x374   : > { %v2058_v34 = vadd.f32 %v2057_v51, %v1999_v62 }
 0x376   : > { %v2120_v32 = vadd.f32 %v2109_v52, %v2058_v34 }
 0x378   : > { %2128 = vst [vmem:[%s4171_s17 + $0x20] sm:$0xff] %v2120_v32 }
 0x379   : > { %v2028_v43 = vpop.f32.mrf.mxu2 }
 0x37b   : > { %v2002_v40 = vpop.f32.mrf.mxu1 }
 0x37c   : > { %v2061_v9 = vadd.f32 %v2060_v37, %v2002_v40 }
 0x37e   : > { %v2122_v53 = vadd.f32 %v2114_v33, %v2061_v9 }
 0x380   : > { %2130 = vst [vmem:[%s4171_s17 + $0x30] sm:$0x3f] %v2122_v53 }
 0x381   : > { %v2031_v10 = vpop.f32.mrf.mxu2 }
 0x382   : > { %v2090_v3 = vadd.f32 %v2089_v54, %v2031_v10 }
 0x383   : > { %v2083_v13 = vpop.f32.mrf.mxu1 }
 0x384   : > { %v2123_v27 = vadd.f32 %v2114_v33, %v2090_v3  ;;  %v2084_v42 = vadd.f32 %v2083_v13, %v2025_v23 }
 0x386   : > { %2131 = vst [vmem:[%s4171_s17 + $0x38] sm:$0x3f] %v2123_v27  ;;  %v2119_v31 = vadd.f32 %v2104_v19, %v2084_v42 }
 0x388   : > { %2127 = vst [vmem:[%s4171_s17 + $0x18] sm:$0xff] %v2119_v31 }
 0x389   : > { %v2086_v47 = vpop.f32.mrf.mxu2 }
 0x38a   : > { %v2087_v35 = vadd.f32 %v2086_v47, %v2028_v43 }
 0x38c   : > { %v2121_v6 = vadd.f32 %v2109_v52, %v2087_v35 }
 0x38e   : > { %2129 = vst [vmem:[%s4171_s17 + $0x28] sm:$0xff] %v2121_v6 }
 0x38f PF: > { %s22_s14 = sadd.s32 1, %s2780_s14   ;;  %s4284_s25 = sld [smem:[#allocation5_spill]] }
 0x390   : > { %p19_p0 = scmp.ge.s32.totalorder %s22_s14, 4   ;;  %s4285_s30 = smov %s2764_s10 }
 0x391   : > { %s4286_s10 = smov %s2768_s11  ;;  %s4287_s11 = smov %s2884_s21 }
 0x392   : > { %s4288_s12 = smov %s2776_s13  ;;  %21 = sbr.rel (!%p19_p0) target bundleno = 4 (0x4), region = 99 }
 0x395   : > { %s4289_s13 = smov %s4284_s25 }
 0x397   :  { %2162 = vsyncpa [#allocation3], 1 }
 0x398   :  { %2164 = vsyncpa [#allocation3 + $0x1], 1 }

</bundles_post_ra>
